<compile_context>
chip_gen: v7x
topology: tpu7x:2x2x1
jax: 0.10.0
libtpu: 0.0.40
codegen_flags: <defaults>
</compile_context>

<pallas_src>
import functools

import jax
import jax.numpy as jnp
from jax import lax
from jax.experimental import pallas as pl
from jax.experimental.pallas import tpu as pltpu

# (dH, dW) circular roll per branch: center, TL, TR, BL, BR
# (matches torch.roll(t, (sh, sw), (2, 3)) in the PyTorch module).
SHIFTS = ((0, 0), (-1, -1), (-1, 1), (1, -1), (1, 1))
NUM_BRANCHES = 5


def _corner_rpn_kernel(x_ref, w3_ref, b3_ref, wh_ref, bh_ref, out_ref, pad_ref,
                       *, branch_width):
    # x_ref:   (1, H, W, C)      bf16 NHWC input for one batch element
    # w3_ref:  (3, 3, C, 5C)     bf16 branch-fused 3x3 conv weights
    # b3_ref:  (1, 5C)           f32 branch-fused 3x3 conv bias
    # wh_ref:  (5C, Ppad)        bf16 block-diagonal fused 1x1 head weights
    #                            ([obj_b | delta_b] per branch, zero-padded to
    #                             a multiple of 128 lanes)
    # bh_ref:  (1, Ppad)         f32 fused head bias
    # out_ref: (1, H, W, Ppad)   f32 fused, lane-dense output
    # pad_ref: (H+2, W+2, C)     f32 VMEM scratch holding the zero-halo image
    H, W, C = x_ref.shape[1], x_ref.shape[2], x_ref.shape[3]
    P = out_ref.shape[3]
    C5 = w3_ref.shape[3]

    # Build the 1-px zero halo in VMEM (no wrapper-side jnp.pad round trip).
    pad_ref[...] = jnp.zeros_like(pad_ref)
    pad_ref[1:H + 1, 1:W + 1, :] = x_ref[0].astype(pad_ref.dtype)

    # Branch-fused 3x3 conv: 9 shifted patches (computed once, shared by every
    # branch), each hitting the MXU once against a (C, 5C) fused weight,
    # accumulated in f32.
    acc = jnp.zeros((H * W, C5), jnp.float32)
    for dy in range(3):
        for dx in range(3):
            patch = pad_ref[dy:dy + H, dx:dx + W, :].reshape(H * W, C)
            acc = acc + jnp.dot(patch.astype(jnp.bfloat16), w3_ref[dy, dx],
                                preferred_element_type=jnp.float32)
    acc = jnp.maximum(acc + b3_ref[...], 0.0)          # bias + ReLU in f32

    # Fused 1x1 heads: one block-diagonal matmul yields [obj_b | delta_b] for
    # all 5 branches at once, already lane-dense.
    heads = jnp.dot(acc.astype(jnp.bfloat16), wh_ref[...],
                    preferred_element_type=jnp.float32) + bh_ref[...]
    heads = heads.reshape(H, W, P)

    # Per-branch circular corner shift, applied to the narrow (A+D)-wide head
    # output (roll commutes with ReLU and the 1x1 convs, so this is exact).
    lane = lax.broadcasted_iota(jnp.int32, (1, 1, P), 2)
    out = heads
    for b in range(1, NUM_BRANCHES):
        sel = jnp.logical_and(lane >= b * branch_width,
                              lane < (b + 1) * branch_width)
        out = jnp.where(sel, jnp.roll(heads, SHIFTS[b], axis=(0, 1)), out)

    out_ref[0] = out.astype(out_ref.dtype)


def prepare_params(params):
    """Fuse/pad the per-branch PyTorch-layout parameters for the kernel."""
    w3, b3 = params["w3"], params["b3"]            # (5,3,3,C,C), (5,C)
    wo, bo = params["wo"], params["bo"]            # (5,C,A), (5,A)
    wd, bd = params["wd"], params["bd"]            # (5,C,D), (5,D)
    C = w3.shape[3]
    A = wo.shape[-1]
    D = wd.shape[-1]
    K = A + D                                      # per-branch head width
    P = NUM_BRANCHES * K
    P_pad = ((P + 127) // 128) * 128               # lane-dense padded width

    # 3x3 conv: fuse branches along the output dim -> (3, 3, C, 5C).
    w3f = jnp.transpose(w3, (1, 2, 3, 0, 4)).reshape(3, 3, C, NUM_BRANCHES * C)
    b3f = b3.reshape(1, NUM_BRANCHES * C).astype(jnp.float32)

    # 1x1 heads: block-diagonal (5C, P_pad); branch b occupies rows
    # [bC,(b+1)C) and columns [bK,(b+1)K) with [objectness | deltas].
    wh = jnp.concatenate([wo, wd], axis=2)         # (5, C, K)
    whd = jnp.zeros((NUM_BRANCHES * C, P_pad), jnp.float32)
    for b in range(NUM_BRANCHES):
        whd = whd.at[b * C:(b + 1) * C, b * K:(b + 1) * K].set(wh[b])
    bh = jnp.zeros((1, P_pad), jnp.float32)
    bh = bh.at[0, :P].set(jnp.concatenate([bo, bd], axis=1).reshape(P))

    return {
        "w3": w3f.astype(jnp.bfloat16),
        "b3": b3f,
        "wh": whd.astype(jnp.bfloat16),
        "bh": bh,
        "branch_width": int(K),
        "num_anchors": int(A),
    }


def _run_one_level(x_nchw, prep):
    """Run the fused kernel for a single feature level; returns per-branch
    (objectness, deltas) NCHW tensors."""
    N, C, H, W = x_nchw.shape
    K = prep["branch_width"]
    A = prep["num_anchors"]
    C5 = prep["w3"].shape[3]
    P = prep["wh"].shape[1]

    # One fused XLA op: NCHW -> NHWC + bf16 cast (halves the input DMA).
    x_nhwc = jnp.transpose(x_nchw, (0, 2, 3, 1)).astype(jnp.bfloat16)

    kernel = functools.partial(_corner_rpn_kernel, branch_width=K)
    fused = pl.pallas_call(
        kernel,
        out_shape=jax.ShapeDtypeStruct((N, H, W, P), jnp.float32),
        grid=(N,),
        in_specs=[
            pl.BlockSpec((1, H, W, C), lambda n: (n, 0, 0, 0)),
            pl.BlockSpec((3, 3, C, C5), lambda n: (0, 0, 0, 0)),
            pl.BlockSpec((1, C5), lambda n: (0, 0)),
            pl.BlockSpec((C5, P), lambda n: (0, 0)),
            pl.BlockSpec((1, P), lambda n: (0, 0)),
        ],
        out_specs=pl.BlockSpec((1, H, W, P), lambda n: (n, 0, 0, 0)),
        scratch_shapes=[pltpu.VMEM((H + 2, W + 2, C), jnp.float32)],
        compiler_params=pltpu.CompilerParams(
            dimension_semantics=("parallel",),
            vmem_limit_bytes=32 * 1024 * 1024),
    )(x_nhwc, prep["w3"], prep["b3"], prep["wh"], prep["bh"])

    # Single NHWC->NCHW transpose of the fused, lane-dense output, then cheap
    # per-branch channel slices (obj = first A channels, deltas = the rest).
    fused_nchw = jnp.transpose(fused, (0, 3, 1, 2))    # (N, P, H, W)
    obj_b, dlt_b = [], []
    for b in range(NUM_BRANCHES):
        blk = fused_nchw[:, b * K:(b + 1) * K]
        obj_b.append(blk[:, :A])
        dlt_b.append(blk[:, A:])
    return obj_b, dlt_b


def corner_shift_rpn_head_forward(features_nchw, params):
    """Matches CornerShiftRPNHead.forward: returns (logits, deltas), each a
    list of 5 branch-lists of per-feature tensors in NCHW."""
    prep = prepare_params(params)
    pred_objectness_logits = [[] for _ in range(NUM_BRANCHES)]
    pred_anchor_deltas = [[] for _ in range(NUM_BRANCHES)]
    for x in features_nchw:
        obj_b, dlt_b = _run_one_level(x, prep)
        for b in range(NUM_BRANCHES):
            pred_objectness_logits[b].append(obj_b[b])
            pred_anchor_deltas[b].append(dlt_b[b])
    return pred_objectness_logits, pred_anchor_deltas


def init_params(key, in_channels, num_anchors, box_dim=4):
    """Deterministic init matching the module: normal(std=0.01) weights, 0 bias.
    Stored as (branch, kh, kw, Cin, Cout) / (branch, Cin, Cout)."""
    A = num_anchors
    D = num_anchors * box_dim
    k1, k2, k3 = jax.random.split(key, 3)
    return {
        "w3": 0.01 * jax.random.normal(k1, (5, 3, 3, in_channels, in_channels),
                                       jnp.float32),
        "b3": jnp.zeros((5, in_channels), jnp.float32),
        "wo": 0.01 * jax.random.normal(k2, (5, in_channels, A), jnp.float32),
        "bo": jnp.zeros((5, A), jnp.float32),
        "wd": 0.01 * jax.random.normal(k3, (5, in_channels, D), jnp.float32),
        "bd": jnp.zeros((5, D), jnp.float32),
    }


def _reference_forward(features_nchw, params):
    """Pure-JAX f32 reference (same math, no Pallas, no fusion)."""
    pred_obj = [[] for _ in range(NUM_BRANCHES)]
    pred_dlt = [[] for _ in range(NUM_BRANCHES)]
    for x in features_nchw:
        xh = jnp.transpose(x, (0, 2, 3, 1))
        for b in range(NUM_BRANCHES):
            t = lax.conv_general_dilated(
                xh, params["w3"][b], (1, 1), "SAME",
                dimension_numbers=("NHWC", "HWIO", "NHWC"),
                precision=lax.Precision.HIGHEST) + params["b3"][b]
            sh, sw = SHIFTS[b]
            if (sh, sw) != (0, 0):
                t = jnp.roll(t, shift=(sh, sw), axis=(1, 2))
            t = jax.nn.relu(t)
            obj = jnp.einsum("nhwc,ca->nhwa", t, params["wo"][b],
                             precision=lax.Precision.HIGHEST) + params["bo"][b]
            dlt = jnp.einsum("nhwc,ca->nhwa", t, params["wd"][b],
                             precision=lax.Precision.HIGHEST) + params["bd"][b]
            pred_obj[b].append(jnp.transpose(obj, (0, 3, 1, 2)))
            pred_dlt[b].append(jnp.transpose(dlt, (0, 3, 1, 2)))
    return pred_obj, pred_dlt


if __name__ == "__main__":
    in_channels = 16
    num_anchors = 3
    box_dim = 4
    batch = 2

    key = jax.random.PRNGKey(0)
    kp, kf0, kf1 = jax.random.split(key, 3)
    params = init_params(kp, in_channels, num_anchors, box_dim)

    # Two feature levels (FPN-like), NCHW as in the PyTorch module.
    features = [
        jax.random.normal(kf0, (batch, in_channels, 16, 16), jnp.float32),
        jax.random.normal(kf1, (batch, in_channels, 8, 8), jnp.float32),
    ]

    logits, deltas = corner_shift_rpn_head_forward(features, params)
    jax.block_until_ready(logits)
    jax.block_until_ready(deltas)

    # Validate against the pure-JAX f32 reference (tolerances account for the
    # intentional bf16 MXU matmuls with f32 accumulation).
    ref_logits, ref_deltas = _reference_forward(features, params)
    for b in range(NUM_BRANCHES):
        for lvl in range(len(features)):
            assert logits[b][lvl].shape == (batch, num_anchors,) + features[lvl].shape[2:]
            assert deltas[b][lvl].shape == (batch, num_anchors * box_dim,) + features[lvl].shape[2:]
            assert jnp.allclose(logits[b][lvl], ref_logits[b][lvl],
                                atol=5e-3, rtol=2e-2)
            assert jnp.allclose(deltas[b][lvl], ref_deltas[b][lvl],
                                atol=5e-3, rtol=2e-2)

    print("KERNEL_OK")
</pallas_src>

<mosaic_0001>
module attributes {stable_mosaic.version = 11 : i64} {
  func.func @_corner_rpn_kernel(%arg0: i32, %arg1: memref<1x16x16x16xbf16, #tpu.memory_space<vmem>>, %arg2: memref<3x3x16x80xbf16, #tpu.memory_space<vmem>>, %arg3: memref<1x80xf32, #tpu.memory_space<vmem>>, %arg4: memref<80x128xbf16, #tpu.memory_space<vmem>>, %arg5: memref<1x128xf32, #tpu.memory_space<vmem>>, %arg6: memref<1x16x16x128xf32, #tpu.memory_space<vmem>>, %arg7: memref<18x18x16xf32, #tpu.memory_space<vmem>>) attributes {dimension_semantics = [#tpu.dimension_semantics<parallel>], iteration_bounds = array<i64: 2>, scalar_prefetch = 0 : i64, scratch_operands = 1 : i64, tpu.core_type = #tpu.core_type<tc>, window_params = [{transform_indices = @transform_0, window_bounds = array<i64: 1, 16, 16, 16>}, {pipeline_mode = #tpu.pipeline_mode<synchronous>, transform_indices = @transform_1, window_bounds = array<i64: 3, 3, 16, 80>}, {pipeline_mode = #tpu.pipeline_mode<synchronous>, transform_indices = @transform_2, window_bounds = array<i64: 1, 80>}, {pipeline_mode = #tpu.pipeline_mode<synchronous>, transform_indices = @transform_3, window_bounds = array<i64: 80, 128>}, {pipeline_mode = #tpu.pipeline_mode<synchronous>, transform_indices = @transform_4, window_bounds = array<i64: 1, 128>}, {transform_indices = @transform_5, window_bounds = array<i64: 1, 16, 16, 128>}]} {
    %cst = arith.constant 0.000000e+00 : f32
    %0 = vector.broadcast %cst : f32 to vector<18x18x16xf32>
    %c0 = arith.constant 0 : index
    %c0_0 = arith.constant 0 : index
    %c0_1 = arith.constant 0 : index
    %1 = vector.load %arg7[%c0, %c0_0, %c0_1] : memref<18x18x16xf32, #tpu.memory_space<vmem>>, vector<18x18x16xf32>
    tpu.vector_store %arg7[%c0, %c0_0, %c0_1], %0 {strides = array<i32>} : memref<18x18x16xf32, #tpu.memory_space<vmem>>, vector<18x18x16xf32>,
    %c0_2 = arith.constant 0 : index
    %c0_3 = arith.constant 0 : index
    %c0_4 = arith.constant 0 : index
    %c0_5 = arith.constant 0 : index
    %2 = vector.load %arg1[%c0_2, %c0_3, %c0_4, %c0_5] : memref<1x16x16x16xbf16, #tpu.memory_space<vmem>>, vector<1x16x16x16xbf16>
    %3 = vector.shape_cast %2 : vector<1x16x16x16xbf16> to vector<16x16x16xbf16>
    %4 = arith.extf %3 : vector<16x16x16xbf16> to vector<16x16x16xf32>
    %c1 = arith.constant 1 : index
    %c1_6 = arith.constant 1 : index
    %c0_7 = arith.constant 0 : index
    %5 = vector.load %arg7[%c1, %c1_6, %c0_7] : memref<18x18x16xf32, #tpu.memory_space<vmem>>, vector<16x16x16xf32>
    tpu.vector_store %arg7[%c1, %c1_6, %c0_7], %4 {strides = array<i32>} : memref<18x18x16xf32, #tpu.memory_space<vmem>>, vector<16x16x16xf32>,
    %cst_8 = arith.constant 0.000000e+00 : f32
    %6 = vector.broadcast %cst_8 : f32 to vector<256x80xf32>
    %c0_9 = arith.constant 0 : index
    %c0_10 = arith.constant 0 : index
    %c0_11 = arith.constant 0 : index
    %7 = vector.load %arg7[%c0_9, %c0_10, %c0_11] : memref<18x18x16xf32, #tpu.memory_space<vmem>>, vector<16x16x16xf32>
    %8 = vector.shape_cast %7 : vector<16x16x16xf32> to vector<256x16xf32>
    %9 = arith.truncf %8 : vector<256x16xf32> to vector<256x16xbf16>
    %c0_12 = arith.constant 0 : index
    %c0_13 = arith.constant 0 : index
    %c0_14 = arith.constant 0 : index
    %c0_15 = arith.constant 0 : index
    %10 = vector.load %arg2[%c0_12, %c0_13, %c0_14, %c0_15] : memref<3x3x16x80xbf16, #tpu.memory_space<vmem>>, vector<1x1x16x80xbf16>
    %11 = vector.shape_cast %10 : vector<1x1x16x80xbf16> to vector<16x80xbf16>
    %cst_16 = arith.constant dense<0.000000e+00> : vector<256x80xf32>
    %12 = tpu.matmul %9, %11, %cst_16 {dimension_numbers = #tpu.dot_dimension_numbers<[1], [0], [0], [1], [0, 0, 1, 1], [], []>} : vector<256x16xbf16>, vector<16x80xbf16>, vector<256x80xf32> -> vector<256x80xf32>
    %13 = arith.addf %6, %12 : vector<256x80xf32>
    %c0_17 = arith.constant 0 : index
    %c1_18 = arith.constant 1 : index
    %c0_19 = arith.constant 0 : index
    %14 = vector.load %arg7[%c0_17, %c1_18, %c0_19] : memref<18x18x16xf32, #tpu.memory_space<vmem>>, vector<16x16x16xf32>
    %15 = vector.shape_cast %14 : vector<16x16x16xf32> to vector<256x16xf32>
    %16 = arith.truncf %15 : vector<256x16xf32> to vector<256x16xbf16>
    %c0_20 = arith.constant 0 : index
    %c1_21 = arith.constant 1 : index
    %c0_22 = arith.constant 0 : index
    %c0_23 = arith.constant 0 : index
    %17 = vector.load %arg2[%c0_20, %c1_21, %c0_22, %c0_23] : memref<3x3x16x80xbf16, #tpu.memory_space<vmem>>, vector<1x1x16x80xbf16>
    %18 = vector.shape_cast %17 : vector<1x1x16x80xbf16> to vector<16x80xbf16>
    %cst_24 = arith.constant dense<0.000000e+00> : vector<256x80xf32>
    %19 = tpu.matmul %16, %18, %cst_24 {dimension_numbers = #tpu.dot_dimension_numbers<[1], [0], [0], [1], [0, 0, 1, 1], [], []>} : vector<256x16xbf16>, vector<16x80xbf16>, vector<256x80xf32> -> vector<256x80xf32>
    %20 = arith.addf %13, %19 : vector<256x80xf32>
    %c0_25 = arith.constant 0 : index
    %c2 = arith.constant 2 : index
    %c0_26 = arith.constant 0 : index
    %21 = vector.load %arg7[%c0_25, %c2, %c0_26] : memref<18x18x16xf32, #tpu.memory_space<vmem>>, vector<16x16x16xf32>
    %22 = vector.shape_cast %21 : vector<16x16x16xf32> to vector<256x16xf32>
    %23 = arith.truncf %22 : vector<256x16xf32> to vector<256x16xbf16>
    %c0_27 = arith.constant 0 : index
    %c2_28 = arith.constant 2 : index
    %c0_29 = arith.constant 0 : index
    %c0_30 = arith.constant 0 : index
    %24 = vector.load %arg2[%c0_27, %c2_28, %c0_29, %c0_30] : memref<3x3x16x80xbf16, #tpu.memory_space<vmem>>, vector<1x1x16x80xbf16>
    %25 = vector.shape_cast %24 : vector<1x1x16x80xbf16> to vector<16x80xbf16>
    %cst_31 = arith.constant dense<0.000000e+00> : vector<256x80xf32>
    %26 = tpu.matmul %23, %25, %cst_31 {dimension_numbers = #tpu.dot_dimension_numbers<[1], [0], [0], [1], [0, 0, 1, 1], [], []>} : vector<256x16xbf16>, vector<16x80xbf16>, vector<256x80xf32> -> vector<256x80xf32>
    %27 = arith.addf %20, %26 : vector<256x80xf32>
    %c1_32 = arith.constant 1 : index
    %c0_33 = arith.constant 0 : index
    %c0_34 = arith.constant 0 : index
    %28 = vector.load %arg7[%c1_32, %c0_33, %c0_34] : memref<18x18x16xf32, #tpu.memory_space<vmem>>, vector<16x16x16xf32>
    %29 = vector.shape_cast %28 : vector<16x16x16xf32> to vector<256x16xf32>
    %30 = arith.truncf %29 : vector<256x16xf32> to vector<256x16xbf16>
    %c1_35 = arith.constant 1 : index
    %c0_36 = arith.constant 0 : index
    %c0_37 = arith.constant 0 : index
    %c0_38 = arith.constant 0 : index
    %31 = vector.load %arg2[%c1_35, %c0_36, %c0_37, %c0_38] : memref<3x3x16x80xbf16, #tpu.memory_space<vmem>>, vector<1x1x16x80xbf16>
    %32 = vector.shape_cast %31 : vector<1x1x16x80xbf16> to vector<16x80xbf16>
    %cst_39 = arith.constant dense<0.000000e+00> : vector<256x80xf32>
    %33 = tpu.matmul %30, %32, %cst_39 {dimension_numbers = #tpu.dot_dimension_numbers<[1], [0], [0], [1], [0, 0, 1, 1], [], []>} : vector<256x16xbf16>, vector<16x80xbf16>, vector<256x80xf32> -> vector<256x80xf32>
    %34 = arith.addf %27, %33 : vector<256x80xf32>
    %c1_40 = arith.constant 1 : index
    %c1_41 = arith.constant 1 : index
    %c0_42 = arith.constant 0 : index
    %35 = vector.load %arg7[%c1_40, %c1_41, %c0_42] : memref<18x18x16xf32, #tpu.memory_space<vmem>>, vector<16x16x16xf32>
    %36 = vector.shape_cast %35 : vector<16x16x16xf32> to vector<256x16xf32>
    %37 = arith.truncf %36 : vector<256x16xf32> to vector<256x16xbf16>
    %c1_43 = arith.constant 1 : index
    %c1_44 = arith.constant 1 : index
    %c0_45 = arith.constant 0 : index
    %c0_46 = arith.constant 0 : index
    %38 = vector.load %arg2[%c1_43, %c1_44, %c0_45, %c0_46] : memref<3x3x16x80xbf16, #tpu.memory_space<vmem>>, vector<1x1x16x80xbf16>
    %39 = vector.shape_cast %38 : vector<1x1x16x80xbf16> to vector<16x80xbf16>
    %cst_47 = arith.constant dense<0.000000e+00> : vector<256x80xf32>
    %40 = tpu.matmul %37, %39, %cst_47 {dimension_numbers = #tpu.dot_dimension_numbers<[1], [0], [0], [1], [0, 0, 1, 1], [], []>} : vector<256x16xbf16>, vector<16x80xbf16>, vector<256x80xf32> -> vector<256x80xf32>
    %41 = arith.addf %34, %40 : vector<256x80xf32>
    %c1_48 = arith.constant 1 : index
    %c2_49 = arith.constant 2 : index
    %c0_50 = arith.constant 0 : index
    %42 = vector.load %arg7[%c1_48, %c2_49, %c0_50] : memref<18x18x16xf32, #tpu.memory_space<vmem>>, vector<16x16x16xf32>
    %43 = vector.shape_cast %42 : vector<16x16x16xf32> to vector<256x16xf32>
    %44 = arith.truncf %43 : vector<256x16xf32> to vector<256x16xbf16>
    %c1_51 = arith.constant 1 : index
    %c2_52 = arith.constant 2 : index
    %c0_53 = arith.constant 0 : index
    %c0_54 = arith.constant 0 : index
    %45 = vector.load %arg2[%c1_51, %c2_52, %c0_53, %c0_54] : memref<3x3x16x80xbf16, #tpu.memory_space<vmem>>, vector<1x1x16x80xbf16>
    %46 = vector.shape_cast %45 : vector<1x1x16x80xbf16> to vector<16x80xbf16>
    %cst_55 = arith.constant dense<0.000000e+00> : vector<256x80xf32>
    %47 = tpu.matmul %44, %46, %cst_55 {dimension_numbers = #tpu.dot_dimension_numbers<[1], [0], [0], [1], [0, 0, 1, 1], [], []>} : vector<256x16xbf16>, vector<16x80xbf16>, vector<256x80xf32> -> vector<256x80xf32>
    %48 = arith.addf %41, %47 : vector<256x80xf32>
    %c2_56 = arith.constant 2 : index
    %c0_57 = arith.constant 0 : index
    %c0_58 = arith.constant 0 : index
    %49 = vector.load %arg7[%c2_56, %c0_57, %c0_58] : memref<18x18x16xf32, #tpu.memory_space<vmem>>, vector<16x16x16xf32>
    %50 = vector.shape_cast %49 : vector<16x16x16xf32> to vector<256x16xf32>
    %51 = arith.truncf %50 : vector<256x16xf32> to vector<256x16xbf16>
    %c2_59 = arith.constant 2 : index
    %c0_60 = arith.constant 0 : index
    %c0_61 = arith.constant 0 : index
    %c0_62 = arith.constant 0 : index
    %52 = vector.load %arg2[%c2_59, %c0_60, %c0_61, %c0_62] : memref<3x3x16x80xbf16, #tpu.memory_space<vmem>>, vector<1x1x16x80xbf16>
    %53 = vector.shape_cast %52 : vector<1x1x16x80xbf16> to vector<16x80xbf16>
    %cst_63 = arith.constant dense<0.000000e+00> : vector<256x80xf32>
    %54 = tpu.matmul %51, %53, %cst_63 {dimension_numbers = #tpu.dot_dimension_numbers<[1], [0], [0], [1], [0, 0, 1, 1], [], []>} : vector<256x16xbf16>, vector<16x80xbf16>, vector<256x80xf32> -> vector<256x80xf32>
    %55 = arith.addf %48, %54 : vector<256x80xf32>
    %c2_64 = arith.constant 2 : index
    %c1_65 = arith.constant 1 : index
    %c0_66 = arith.constant 0 : index
    %56 = vector.load %arg7[%c2_64, %c1_65, %c0_66] : memref<18x18x16xf32, #tpu.memory_space<vmem>>, vector<16x16x16xf32>
    %57 = vector.shape_cast %56 : vector<16x16x16xf32> to vector<256x16xf32>
    %58 = arith.truncf %57 : vector<256x16xf32> to vector<256x16xbf16>
    %c2_67 = arith.constant 2 : index
    %c1_68 = arith.constant 1 : index
    %c0_69 = arith.constant 0 : index
    %c0_70 = arith.constant 0 : index
    %59 = vector.load %arg2[%c2_67, %c1_68, %c0_69, %c0_70] : memref<3x3x16x80xbf16, #tpu.memory_space<vmem>>, vector<1x1x16x80xbf16>
    %60 = vector.shape_cast %59 : vector<1x1x16x80xbf16> to vector<16x80xbf16>
    %cst_71 = arith.constant dense<0.000000e+00> : vector<256x80xf32>
    %61 = tpu.matmul %58, %60, %cst_71 {dimension_numbers = #tpu.dot_dimension_numbers<[1], [0], [0], [1], [0, 0, 1, 1], [], []>} : vector<256x16xbf16>, vector<16x80xbf16>, vector<256x80xf32> -> vector<256x80xf32>
    %62 = arith.addf %55, %61 : vector<256x80xf32>
    %c2_72 = arith.constant 2 : index
    %c2_73 = arith.constant 2 : index
    %c0_74 = arith.constant 0 : index
    %63 = vector.load %arg7[%c2_72, %c2_73, %c0_74] : memref<18x18x16xf32, #tpu.memory_space<vmem>>, vector<16x16x16xf32>
    %64 = vector.shape_cast %63 : vector<16x16x16xf32> to vector<256x16xf32>
    %65 = arith.truncf %64 : vector<256x16xf32> to vector<256x16xbf16>
    %c2_75 = arith.constant 2 : index
    %c2_76 = arith.constant 2 : index
    %c0_77 = arith.constant 0 : index
    %c0_78 = arith.constant 0 : index
    %66 = vector.load %arg2[%c2_75, %c2_76, %c0_77, %c0_78] : memref<3x3x16x80xbf16, #tpu.memory_space<vmem>>, vector<1x1x16x80xbf16>
    %67 = vector.shape_cast %66 : vector<1x1x16x80xbf16> to vector<16x80xbf16>
    %cst_79 = arith.constant dense<0.000000e+00> : vector<256x80xf32>
    %68 = tpu.matmul %65, %67, %cst_79 {dimension_numbers = #tpu.dot_dimension_numbers<[1], [0], [0], [1], [0, 0, 1, 1], [], []>} : vector<256x16xbf16>, vector<16x80xbf16>, vector<256x80xf32> -> vector<256x80xf32>
    %69 = arith.addf %62, %68 : vector<256x80xf32>
    %c0_80 = arith.constant 0 : index
    %c0_81 = arith.constant 0 : index
    %70 = vector.load %arg3[%c0_80, %c0_81] : memref<1x80xf32, #tpu.memory_space<vmem>>, vector<1x80xf32>
    %71 = vector.broadcast %70 : vector<1x80xf32> to vector<256x80xf32>
    %72 = arith.addf %69, %71 : vector<256x80xf32>
    %cst_82 = arith.constant 0.000000e+00 : f32
    %73 = vector.broadcast %cst_82 : f32 to vector<256x80xf32>
    %74 = arith.maximumf %72, %73 : vector<256x80xf32>
    %75 = arith.truncf %74 : vector<256x80xf32> to vector<256x80xbf16>
    %c0_83 = arith.constant 0 : index
    %c0_84 = arith.constant 0 : index
    %76 = vector.load %arg4[%c0_83, %c0_84] : memref<80x128xbf16, #tpu.memory_space<vmem>>, vector<80x128xbf16>
    %cst_85 = arith.constant dense<0.000000e+00> : vector<256x128xf32>
    %77 = tpu.matmul %75, %76, %cst_85 {dimension_numbers = #tpu.dot_dimension_numbers<[1], [0], [0], [1], [0, 0, 1, 1], [], []>} : vector<256x80xbf16>, vector<80x128xbf16>, vector<256x128xf32> -> vector<256x128xf32>
    %c0_86 = arith.constant 0 : index
    %c0_87 = arith.constant 0 : index
    %78 = vector.load %arg5[%c0_86, %c0_87] : memref<1x128xf32, #tpu.memory_space<vmem>>, vector<1x128xf32>
    %79 = vector.broadcast %78 : vector<1x128xf32> to vector<256x128xf32>
    %80 = arith.addf %77, %79 : vector<256x128xf32>
    %81 = vector.shape_cast %80 : vector<256x128xf32> to vector<16x16x128xf32>
    %82 = tpu.iota {dimensions = array<i32: 2>} : vector<1x1x128xi32>
    %c15_i32 = arith.constant 15 : i32
    %83 = vector.broadcast %c15_i32 : i32 to vector<1x1x128xi32>
    %84 = arith.cmpi sge, %82, %83 : vector<1x1x128xi32>
    %c30_i32 = arith.constant 30 : i32
    %85 = vector.broadcast %c30_i32 : i32 to vector<1x1x128xi32>
    %86 = arith.cmpi slt, %82, %85 : vector<1x1x128xi32>
    %87 = arith.andi %84, %86 : vector<1x1x128xi1>
    %88 = vector.extract_strided_slice %81 {offsets = [1, 0, 0], sizes = [15, 16, 128], strides = [1, 1, 1]} : vector<16x16x128xf32> to vector<15x16x128xf32>
    %89 = vector.extract_strided_slice %81 {offsets = [0, 0, 0], sizes = [1, 16, 128], strides = [1, 1, 1]} : vector<16x16x128xf32> to vector<1x16x128xf32>
    %90 = tpu.concatenate %88, %89 in 0 : vector<15x16x128xf32>, vector<1x16x128xf32> -> vector<16x16x128xf32>
    %91 = vector.extract_strided_slice %90 {offsets = [0, 1, 0], sizes = [16, 15, 128], strides = [1, 1, 1]} : vector<16x16x128xf32> to vector<16x15x128xf32>
    %92 = vector.extract_strided_slice %90 {offsets = [0, 0, 0], sizes = [16, 1, 128], strides = [1, 1, 1]} : vector<16x16x128xf32> to vector<16x1x128xf32>
    %93 = tpu.concatenate %91, %92 in 1 : vector<16x15x128xf32>, vector<16x1x128xf32> -> vector<16x16x128xf32>
    %94 = vector.shape_cast %87 : vector<1x1x128xi1> to vector<1x1x128xi1>
    %95 = vector.broadcast %94 : vector<1x1x128xi1> to vector<16x16x128xi1>
    %96 = arith.select %95, %93, %81 : vector<16x16x128xi1>, vector<16x16x128xf32>
    %c30_i32_88 = arith.constant 30 : i32
    %97 = vector.broadcast %c30_i32_88 : i32 to vector<1x1x128xi32>
    %98 = arith.cmpi sge, %82, %97 : vector<1x1x128xi32>
    %c45_i32 = arith.constant 45 : i32
    %99 = vector.broadcast %c45_i32 : i32 to vector<1x1x128xi32>
    %100 = arith.cmpi slt, %82, %99 : vector<1x1x128xi32>
    %101 = arith.andi %98, %100 : vector<1x1x128xi1>
    %102 = vector.extract_strided_slice %81 {offsets = [1, 0, 0], sizes = [15, 16, 128], strides = [1, 1, 1]} : vector<16x16x128xf32> to vector<15x16x128xf32>
    %103 = vector.extract_strided_slice %81 {offsets = [0, 0, 0], sizes = [1, 16, 128], strides = [1, 1, 1]} : vector<16x16x128xf32> to vector<1x16x128xf32>
    %104 = tpu.concatenate %102, %103 in 0 : vector<15x16x128xf32>, vector<1x16x128xf32> -> vector<16x16x128xf32>
    %105 = vector.extract_strided_slice %104 {offsets = [0, 15, 0], sizes = [16, 1, 128], strides = [1, 1, 1]} : vector<16x16x128xf32> to vector<16x1x128xf32>
    %106 = vector.extract_strided_slice %104 {offsets = [0, 0, 0], sizes = [16, 15, 128], strides = [1, 1, 1]} : vector<16x16x128xf32> to vector<16x15x128xf32>
    %107 = tpu.concatenate %105, %106 in 1 : vector<16x1x128xf32>, vector<16x15x128xf32> -> vector<16x16x128xf32>
    %108 = vector.shape_cast %101 : vector<1x1x128xi1> to vector<1x1x128xi1>
    %109 = vector.broadcast %108 : vector<1x1x128xi1> to vector<16x16x128xi1>
    %110 = arith.select %109, %107, %96 : vector<16x16x128xi1>, vector<16x16x128xf32>
    %c45_i32_89 = arith.constant 45 : i32
    %111 = vector.broadcast %c45_i32_89 : i32 to vector<1x1x128xi32>
    %112 = arith.cmpi sge, %82, %111 : vector<1x1x128xi32>
    %c60_i32 = arith.constant 60 : i32
    %113 = vector.broadcast %c60_i32 : i32 to vector<1x1x128xi32>
    %114 = arith.cmpi slt, %82, %113 : vector<1x1x128xi32>
    %115 = arith.andi %112, %114 : vector<1x1x128xi1>
    %116 = vector.extract_strided_slice %81 {offsets = [15, 0, 0], sizes = [1, 16, 128], strides = [1, 1, 1]} : vector<16x16x128xf32> to vector<1x16x128xf32>
    %117 = vector.extract_strided_slice %81 {offsets = [0, 0, 0], sizes = [15, 16, 128], strides = [1, 1, 1]} : vector<16x16x128xf32> to vector<15x16x128xf32>
    %118 = tpu.concatenate %116, %117 in 0 : vector<1x16x128xf32>, vector<15x16x128xf32> -> vector<16x16x128xf32>
    %119 = vector.extract_strided_slice %118 {offsets = [0, 1, 0], sizes = [16, 15, 128], strides = [1, 1, 1]} : vector<16x16x128xf32> to vector<16x15x128xf32>
    %120 = vector.extract_strided_slice %118 {offsets = [0, 0, 0], sizes = [16, 1, 128], strides = [1, 1, 1]} : vector<16x16x128xf32> to vector<16x1x128xf32>
    %121 = tpu.concatenate %119, %120 in 1 : vector<16x15x128xf32>, vector<16x1x128xf32> -> vector<16x16x128xf32>
    %122 = vector.shape_cast %115 : vector<1x1x128xi1> to vector<1x1x128xi1>
    %123 = vector.broadcast %122 : vector<1x1x128xi1> to vector<16x16x128xi1>
    %124 = arith.select %123, %121, %110 : vector<16x16x128xi1>, vector<16x16x128xf32>
    %c60_i32_90 = arith.constant 60 : i32
    %125 = vector.broadcast %c60_i32_90 : i32 to vector<1x1x128xi32>
    %126 = arith.cmpi sge, %82, %125 : vector<1x1x128xi32>
    %c75_i32 = arith.constant 75 : i32
    %127 = vector.broadcast %c75_i32 : i32 to vector<1x1x128xi32>
    %128 = arith.cmpi slt, %82, %127 : vector<1x1x128xi32>
    %129 = arith.andi %126, %128 : vector<1x1x128xi1>
    %130 = vector.extract_strided_slice %81 {offsets = [15, 0, 0], sizes = [1, 16, 128], strides = [1, 1, 1]} : vector<16x16x128xf32> to vector<1x16x128xf32>
    %131 = vector.extract_strided_slice %81 {offsets = [0, 0, 0], sizes = [15, 16, 128], strides = [1, 1, 1]} : vector<16x16x128xf32> to vector<15x16x128xf32>
    %132 = tpu.concatenate %130, %131 in 0 : vector<1x16x128xf32>, vector<15x16x128xf32> -> vector<16x16x128xf32>
    %133 = vector.extract_strided_slice %132 {offsets = [0, 15, 0], sizes = [16, 1, 128], strides = [1, 1, 1]} : vector<16x16x128xf32> to vector<16x1x128xf32>
    %134 = vector.extract_strided_slice %132 {offsets = [0, 0, 0], sizes = [16, 15, 128], strides = [1, 1, 1]} : vector<16x16x128xf32> to vector<16x15x128xf32>
    %135 = tpu.concatenate %133, %134 in 1 : vector<16x1x128xf32>, vector<16x15x128xf32> -> vector<16x16x128xf32>
    %136 = vector.shape_cast %129 : vector<1x1x128xi1> to vector<1x1x128xi1>
    %137 = vector.broadcast %136 : vector<1x1x128xi1> to vector<16x16x128xi1>
    %138 = arith.select %137, %135, %124 : vector<16x16x128xi1>, vector<16x16x128xf32>
    %c0_91 = arith.constant 0 : index
    %c0_92 = arith.constant 0 : index
    %c0_93 = arith.constant 0 : index
    %c0_94 = arith.constant 0 : index
    %139 = vector.load %arg6[%c0_91, %c0_92, %c0_93, %c0_94] : memref<1x16x16x128xf32, #tpu.memory_space<vmem>>, vector<1x16x16x128xf32>
    %140 = vector.shape_cast %139 : vector<1x16x16x128xf32> to vector<16x16x128xf32>
    %141 = vector.shape_cast %138 : vector<16x16x128xf32> to vector<1x16x16x128xf32>
    tpu.vector_store %arg6[%c0_91, %c0_92, %c0_93, %c0_94], %141 {strides = array<i32>} : memref<1x16x16x128xf32, #tpu.memory_space<vmem>>, vector<1x16x16x128xf32>,
    return
  }
  func.func @transform_0(%arg0: i32) -> (i32, i32, i32, i32) {
    %c0_i32 = arith.constant 0 : i32
    %c0_i32_0 = arith.constant 0 : i32
    %c0_i32_1 = arith.constant 0 : i32
    %c0_i32_2 = arith.constant 0 : i32
    return %arg0, %c0_i32, %c0_i32_0, %c0_i32_1 : i32, i32, i32, i32
  }
  func.func @transform_1(%arg0: i32) -> (i32, i32, i32, i32) {
    %c0_i32 = arith.constant 0 : i32
    %c0_i32_0 = arith.constant 0 : i32
    %c0_i32_1 = arith.constant 0 : i32
    %c0_i32_2 = arith.constant 0 : i32
    %c0_i32_3 = arith.constant 0 : i32
    return %c0_i32, %c0_i32_0, %c0_i32_1, %c0_i32_2 : i32, i32, i32, i32
  }
  func.func @transform_2(%arg0: i32) -> (i32, i32) {
    %c0_i32 = arith.constant 0 : i32
    %c0_i32_0 = arith.constant 0 : i32
    %c0_i32_1 = arith.constant 0 : i32
    return %c0_i32, %c0_i32_0 : i32, i32
  }
  func.func @transform_3(%arg0: i32) -> (i32, i32) {
    %c0_i32 = arith.constant 0 : i32
    %c0_i32_0 = arith.constant 0 : i32
    %c0_i32_1 = arith.constant 0 : i32
    return %c0_i32, %c0_i32_0 : i32, i32
  }
  func.func @transform_4(%arg0: i32) -> (i32, i32) {
    %c0_i32 = arith.constant 0 : i32
    %c0_i32_0 = arith.constant 0 : i32
    %c0_i32_1 = arith.constant 0 : i32
    return %c0_i32, %c0_i32_0 : i32, i32
  }
  func.func @transform_5(%arg0: i32) -> (i32, i32, i32, i32) {
    %c0_i32 = arith.constant 0 : i32
    %c0_i32_0 = arith.constant 0 : i32
    %c0_i32_1 = arith.constant 0 : i32
    %c0_i32_2 = arith.constant 0 : i32
    return %arg0, %c0_i32, %c0_i32_0, %c0_i32_1 : i32, i32, i32, i32
  }
}

</mosaic_0001>

<bundles_post_ra>
// kernel: tpu_custom_call.1
= control target key start
LH: loop header
LB: loop body
LE: loop exit
PB: predicated region body
PF: predicated region fallthrough
CT: control target
= control target key end

     0   :  { %10 = vsyncpa [#allocation4], 0  ;;  %s6776_s0 = inlined_call_operand.hbm [shape: bf16[2,16,16,16], index: 0, kind: input, shape index: {}]   ;;  %s6777_s1 = inlined_call_operand.hbm [shape: bf16[3,3,16,80], index: 1, kind: input, shape index: {}]   ;;  %s6778_s2 = inlined_call_operand.vmem [shape: f32[1,80], index: 2, kind: input, shape index: {}]   ;;  %s6779_s3 = inlined_call_operand.hbm [shape: bf16[80,128], index: 3, kind: input, shape index: {}]   ;;  %s6780_s4 = inlined_call_operand.vmem [shape: f32[1,128], index: 4, kind: input, shape index: {}]   ;;  %s6781_s5 = inlined_call_operand.hbm [shape: f32[2,16,16,128], index: 5, kind: output, shape index: {}]  }
   0x1   :  { %12 = vsyncpa [#allocation4 + $0x1], 0 }
   0x2   :  { %13 = vsyncpa [#allocation7], 0 }
   0x3   :  { %14 = vsyncpa [#allocation5], 0 }
   0x4   :  { %16 = vsyncpa [#allocation5 + $0x1], 0  ;;  %s5270_s18 = smov 0   ;;  %s5272_s19 = smov 0  }
   0x5   :  { %s5274_s20 = smov 0   ;;  %s5276_s21 = smov 0  }
   0x6 LB: > { %s5291_s22 = sadd.s32 4294967295, %s5229_s21   ;;  %s3934_s23 = sadd.s32 4294967294, %s5229_s21   ;;  %s5229_s21 = sphi %s5276_s21, %s6809_s21   ;;  %s5225_s20 = sphi %s5274_s20, %s6808_s20   ;;  %s5221_s19 = sphi %s5272_s19, %s6807_s19   ;;  %s5217_s18 = sphi %s5270_s18, %s6806_s18  }
   0x7   : > { %p42_p0 = scmp.ne.s32.totalorder %s5221_s19, %s5217_s18  ;;  %p6782_p1 = scmp.eq.s32.totalorder %s5291_s22, 0 }
   0x8   : > { %p156_p3 = scmp.eq.s32.totalorder %s3934_s23, 1  ;;  %p3935_p5 = scmp.ge.s32.totalorder %s5229_s21, 1 }
   0x9   : > { %p5300_p4 = por %p6782_p1, %p42_p0  ;;  %p163_p7 = scmp.lt.s32.totalorder %s5229_s21, 3 }
   0xa   : > { %p5305_p6 = por %p156_p3, %p42_p0  ;;  %s5231_s27 = smov [#allocation6]  }
   0xb   : > { %s6785_s24 = scalar_select %p5300_p4, 1, 0 }
   0xc   : > { %s6786_s25 = scalar_select %p5305_p6, 1, 0 }
   0xd   : > { %p5310_p8 = pnand %p3935_p5, %p163_p7  ;;  %s175_s28 = sshll.u32 %s5231_s27, 4  ;;  %s5314_s28 = int_to_ptr.vmem [resolvable:$true] %s175_s28 }
   0xe   : > { %s5232_s30 = smov [#allocation8]   ;;  %s5073_s9 = scalar_lea.hbm %s6777_s1, 1152 }
   0xf   : > { %p4999_p9 = pneg %p5310_p8  ;;  %s191_s6 = sshll.u32 %s5232_s30, 4  ;;  %s5325_s6 = int_to_ptr.vmem [resolvable:$true] %s191_s6 }
  0x10   : > { %p5074_p12 = scmp.ne.s32.totalorder %s6777_s1, %s5073_s9  ;;  %p5080_p5 = scmp.lt.u32.totalorder %s5073_s9, %s6777_s1 }
  0x11   : > { %p5321_p11 = pnand %p4999_p9, %p6782_p1 }
  0x13   : > { %p5075_p13 = pneg %p5321_p11 }
  0x15   : > { %p5076_p0 = pnand %p5075_p13, %p5074_p12 }
  0x17   : > { %p5077_p3 = pneg %p5076_p0 }
  0x19   : > { %p5082_p7 = pnand %p5080_p5, %p5077_p3 }
  0x1b   : > { %5085 = shalt.err (!%p5082_p7)
}
  0x1c   : > { %s5086_s14 = scalar_lea.vmem %s5314_s28, 1152  ;;  %p5094_p2 = scmp.lt.s32.totalorder %s5314_s28, %s5314_s28 }
  0x1d   : > { %p5087_p9 = scmp.ne.s32.totalorder %s5314_s28, %s5086_s14  ;;  %p5095_p12 = scmp.lt.s32.totalorder %s5086_s14, %s5086_s14 }
  0x1f   : > { %p5089_p10 = pnand %p5087_p9, %p5075_p13  ;;  %p5096_p0 = por %p5095_p12, %p5094_p2 }
  0x21   : > { %p5090_p1 = pneg %p5089_p10 }
  0x23   : > { %p5097_p6 = pnand %p5096_p0, %p5090_p1 }
  0x25   : > { %5100 = shalt.err (!%p5097_p6)
}
  0x26   : > { %s5233_s15 = smov 64   ;;  %s5234_s16 = smov 4  }
  0x27   : > { %5002 = dma.hbm_to_vmem [thread:$0]  (!%p5321_p11), %s6777_s1, 1152, %s5314_s28, [#allocation7], %s5233_s15, %s5233_s15, %s5234_s16  }
  0x28   : > { %s5101_s7 = scalar_lea.hbm %s6779_s3, 640 }
  0x29   : > { %p5102_p1 = scmp.ne.s32.totalorder %s6779_s3, %s5101_s7  ;;  %p5108_p10 = scmp.lt.u32.totalorder %s5101_s7, %s6779_s3 }
  0x2b   : > { %p5104_p2 = pnand %p5102_p1, %p5075_p13 }
  0x2d   : > { %p5105_p6 = pneg %p5104_p2 }
  0x2f   : > { %p5110_p3 = pnand %p5108_p10, %p5105_p6 }
  0x31   : > { %5113 = shalt.err (!%p5110_p3)
}
  0x32   : > { %s5114_s28 = scalar_lea.vmem %s5325_s6, 640  ;;  %p5122_p12 = scmp.lt.s32.totalorder %s5325_s6, %s5325_s6 }
  0x33   : > { %p5115_p5 = scmp.ne.s32.totalorder %s5325_s6, %s5114_s28  ;;  %p5123_p0 = scmp.lt.s32.totalorder %s5114_s28, %s5114_s28 }
  0x35   : > { %p5117_p7 = pnand %p5115_p5, %p5075_p13  ;;  %p5124_p1 = por %p5123_p0, %p5122_p12 }
  0x37   : > { %p5118_p9 = pneg %p5117_p7 }
  0x39   : > { %p5125_p2 = pnand %p5124_p1, %p5118_p9 }
  0x3b   : > { %5128 = shalt.err (!%p5125_p2)
}
  0x3c   : > { %5005 = dma.hbm_to_vmem [thread:$0]  (!%p5321_p11), %s6779_s3, 640, %s5325_s6, [#allocation7], %s5233_s15, %s5233_s15, %s5234_s16  }
  0x3d   : > { %s5386_s29 = sadd.s32 1, %s5229_s21   ;;  %s29_s14 = sadd.s32 1, %s5225_s20 }
  0x3e   : > { %s26_s17 = ssub.s32 %s5229_s21, %s5386_s29  ;;  %p36_p13 = scmp.ne.s32.totalorder %s5225_s20, %s5221_s19 }
  0x3f   : > { %p27_p6 = scmp.eq.s32.totalorder %s26_s17, 0  ;;  %p37_p10 = scmp.eq.s32.totalorder %s5229_s21, 0 }
  0x40   : > { %p6789_p3 = scmp.eq.s32.totalorder %s5291_s22, 1  ;;  %p5016_p7 = scmp.lt.s32.totalorder %s5229_s21, 2 }
  0x41   : > { %s5402_s27 = scalar_select %p27_p6, %s5225_s20, %s29_s14  }
  0x42   : > { %p5396_p5 = por %p6789_p3, %p36_p13  ;;  %p38_p9 = por %p37_p10, %p36_p13 }
  0x43   : > { %s208_s30 = sand.u32 1, %s5225_s20   ;;  %s4128_s6 = sshll.u32 %s5229_s21, 11 }
  0x44   : > { %s6790_s23 = scalar_select %p5396_p5, 1, 0 }
  0x45   : > { %s3939_s7 = sshll.u32 %s208_s30, 7  ;;  %s5409_s10 = scalar_lea.hbm %s6776_s0, %s4128_s6 }
  0x46   : > { %s212_s11 = scalar_lea.vmem [#allocation3], %s3939_s7  ;;  %p5413_p11 = pnand %p5016_p7, %p38_p9 }
  0x47   : > { %s219_s28 = sshll.u32 %s212_s11, 4  ;;  %s5417_s13 = scalar_lea.sflag [#allocation4], %s208_s30  ;;  %s5411_s28 = int_to_ptr.vmem [resolvable:$true] %s219_s28 }
  0x48   : > { %s5129_s14 = scalar_lea.hbm %s5409_s10, 2048  ;;  %p5131_p0 = pneg %p5413_p11 }
  0x49   : > { %p5130_p12 = scmp.ne.s32.totalorder %s5409_s10, %s5129_s14  ;;  %s5134_s6 = scalar_lea.hbm %s6776_s0, 4096 }
  0x4a   : > { %p5135_p13 = scmp.lt.u32.totalorder %s5409_s10, %s6776_s0  ;;  %p5136_p6 = scmp.lt.u32.totalorder %s5134_s6, %s5129_s14 }
  0x4b   : > { %p5132_p1 = pnand %p5131_p0, %p5130_p12  ;;  %p5138_p3 = scmp.lt.u32.totalorder %s5129_s14, %s5409_s10 }
  0x4c   : > { %p5137_p10 = por %p5136_p6, %p5135_p13 }
  0x4d   : > { %p5133_p2 = pneg %p5132_p1 }
  0x4e   : > { %p5139_p7 = por %p5138_p3, %p5137_p10 }
  0x50   : > { %p5140_p9 = pnand %p5139_p7, %p5133_p2 }
  0x52   : > { %5143 = shalt.err (!%p5140_p9)
}
  0x53   : > { %s5144_s30 = scalar_lea.vmem %s5411_s28, 2048  ;;  %s5235_s11 = smov [#allocation3]  }
  0x54   : > { %p5145_p12 = scmp.ne.s32.totalorder %s5411_s28, %s5144_s30  ;;  %s5149_s17 = sshll.u32 %s5235_s11, 4  ;;  %s5150_s17 = int_to_ptr.vmem [resolvable:$false] %s5149_s17 }
  0x55   : > { %s5151_s7 = scalar_lea.vmem %s5150_s17, 4096  ;;  %p5152_p4 = scmp.lt.s32.totalorder %s5411_s28, %s5150_s17 }
  0x56   : > { %p5147_p1 = pnand %p5145_p12, %p5131_p0  ;;  %p5153_p13 = scmp.lt.s32.totalorder %s5151_s7, %s5144_s30 }
  0x58   : > { %p5148_p5 = pneg %p5147_p1  ;;  %p5154_p6 = por %p5153_p13, %p5152_p4 }
  0x5a   : > { %p5155_p10 = pnand %p5154_p6, %p5148_p5 }
  0x5c   : > { %5158 = shalt.err (!%p5155_p10)
}
  0x5d   : > { %5009 = dma.hbm_to_vmem [thread:$0]  (!%p5413_p11), %s5409_s10, 2048, %s5411_s28, %s5417_s13, %s5233_s15, %s5233_s15, %s5234_s16  }
  0x5e   : > { %231 = sbr.rel (%p5310_p8) target bundleno = 932 (0x3a4), region = 40  ;;  %s5451_s14 = sand.u32 (!%p5310_p8), 1, %s5221_s19  }
  0x5f   : > { %s3943_s6 = sshll.u32 (!%p5310_p8), %s5451_s14, 7  ;;  %s234_s8 = scalar_lea.sflag (!%p5310_p8), [#allocation4], %s5451_s14 }
  0x60   : > { %s5455_s9 = scalar_lea.vmem (!%p5310_p8), [#allocation3], %s3943_s6  ;;  %p6792_p4 = scmp.ne.s32.totalorder (!%p5310_p8), %s6785_s24, 0 }
  0x65   : > { %5204 = dma.done.wait (%p6792_p4), %s234_s8, 2048  }
  0x66   : > { %5206 = vsyncadd (%p6792_p4), %s234_s8, 4294965248  ;;  %p6793_p5 = scmp.eq.s32.totalorder %s5291_s22, 0 }
  0x68   : > { %5208 = dma.done.wait (%p6793_p5), [#allocation7], 1792   ;;  %p6794_p8 = pmov %p6793_p5 }
  0x69   : > { %vm273_vm0 = vcmask 130048   ;;  %vm276_vm1 = vcmask 123904   ;;  %v5236_v0 = vmov 0.0   ;;  %v5059_v1 = vld [vmem:[#allocation6 + $0x8] sm:$0xff]   ;;  %v5060_v2 = vld [vmem:[#allocation6 + $0x20] sm:$0xff]   ;;  %v4195_v11 = vld [vmem:[%s5455_s9 + $0x10] sm:$0xff]  }
  0x6a   : > { %5210 = vsyncadd (%p6794_p8), [#allocation7], 4294965504  ;;  %274 = vst.msk [vmem:[#allocation2] sm:$0xff] %vm273_vm0, %v5236_v0  ;;  %4383 = vmatprep.subr.bf16.mxu1 %v5059_v1  ;;  %v4131_v5 = vld [vmem:[%s5455_s9] sm:$0xff]   ;;  %4519 = vmatprep.subr.bf16.mxu0 %v5060_v2  ;;  %v5520_v9 = vld [vmem:[#allocation6 + $0x28] sm:$0xff]   ;;  %v4140_v15 = vunpack.c.l.bf16 %v4195_v11  ;;  %v4141_v16 = vunpack.c.h.bf16 %v4195_v11  ;;  %vm3178_vm2 = vcmask 654336  }
  0x6b   : > { %275 = vst.msk [vmem:[#allocation2 + $0x8] sm:$0xff] %vm273_vm0, %v5236_v0  ;;  %278 = vst.msk [vmem:[#allocation2 + $0x18] sm:$0xff] %vm273_vm0, %v5236_v0  ;;  %4384 = vmatpush3.bf16.msra.mxu1 %v5059_v1  ;;  %v4132_v7 = vunpack.c.l.bf16 %v4131_v5  ;;  %v4133_v8 = vunpack.c.h.bf16 %v4131_v5  ;;  %4520 = vmatpush3.bf16.msra.mxu0 %v5060_v2  ;;  %v4194_v10 = vld [vmem:[%s5455_s9 + $0x8] sm:$0xff]   ;;  %v4196_v12 = vld [vmem:[%s5455_s9 + $0x18] sm:$0xff]   ;;  %vm3425_vm7 = vcmask 1046528   ;;  %vm3607_vm8 = vcmask 1040384  }
  0x6c   : > { %277 = vst.msk [vmem:[#allocation2 + $0x10] sm:$0x3] %vm276_vm1, %v5236_v0  ;;  %280 = vst.msk [vmem:[#allocation2 + $0x28] sm:$0x3] %vm276_vm1, %v5236_v0  ;;  %4553 = vmatprep.subr.bf16.mxu0 %v5520_v9  ;;  %v4136_v13 = vunpack.c.l.bf16 %v4194_v10  ;;  %v4137_v14 = vunpack.c.h.bf16 %v4194_v10  ;;  %v4197_v17 = vld [vmem:[%s5455_s9 + $0x20] sm:$0xff]   ;;  %v4198_v18 = vld [vmem:[%s5455_s9 + $0x28] sm:$0xff]   ;;  %v4144_v20 = vunpack.c.l.bf16 %v4196_v12  ;;  %v4145_v21 = vunpack.c.h.bf16 %v4196_v12 }
  0x6d   : > { %279 = vst.msk [vmem:[#allocation2 + $0x20] sm:$0xff] %vm273_vm0, %v5236_v0  ;;  %281 = vst.msk [vmem:[#allocation2 + $0x30] sm:$0xff] %vm273_vm0, %v5236_v0  ;;  %v4199_v19 = vld [vmem:[%s5455_s9 + $0x30] sm:$0xff]   ;;  %v4148_v22 = vunpack.c.l.bf16 %v4197_v17  ;;  %v4149_v23 = vunpack.c.h.bf16 %v4197_v17  ;;  %v4200_v24 = vld [vmem:[%s5455_s9 + $0x38] sm:$0xff]   ;;  %v4152_v27 = vunpack.c.l.bf16 %v4198_v18  ;;  %v4153_v28 = vunpack.c.h.bf16 %v4198_v18  ;;  %s3946_s10 = sshll.u32 %s5451_s14, 8  ;;  %s4129_s12 = sshll.u32 %s5291_s22, 12 }
  0x6e   : > { %282 = vst.msk [vmem:[#allocation2 + $0x38] sm:$0xff] %vm273_vm0, %v5236_v0  ;;  %284 = vst.msk [vmem:[#allocation2 + $0x48] sm:$0xff] %vm273_vm0, %v5236_v0  ;;  %v4201_v25 = vld [vmem:[%s5455_s9 + $0x40] sm:$0xff]   ;;  %v4202_v26 = vld [vmem:[%s5455_s9 + $0x48] sm:$0xff]   ;;  %v4156_v29 = vunpack.c.l.bf16 %v4199_v19  ;;  %v4157_v30 = vunpack.c.h.bf16 %v4199_v19  ;;  %v4160_v34 = vunpack.c.l.bf16 %v4200_v24  ;;  %v4161_v35 = vunpack.c.h.bf16 %v4200_v24  ;;  %s6214_s28 = scalar_lea.vmem [#allocation9], %s3946_s10  ;;  %s6706_s11 = scalar_lea.hbm %s6781_s5, %s4129_s12 }
  0x6f   : > { %283 = vst.msk [vmem:[#allocation2 + $0x40] sm:$0x3] %vm276_vm1, %v5236_v0  ;;  %286 = vst.msk [vmem:[#allocation2 + $0x58] sm:$0x3] %vm276_vm1, %v5236_v0  ;;  %v4203_v31 = vld [vmem:[%s5455_s9 + $0x50] sm:$0xff]   ;;  %v4204_v32 = vld [vmem:[%s5455_s9 + $0x58] sm:$0xff]   ;;  %v4164_v36 = vunpack.c.l.bf16 %v4201_v25  ;;  %v4165_v37 = vunpack.c.h.bf16 %v4201_v25  ;;  %v4168_v41 = vunpack.c.l.bf16 %v4202_v26  ;;  %v4169_v42 = vunpack.c.h.bf16 %v4202_v26 }
  0x70   : > { %285 = vst.msk [vmem:[#allocation2 + $0x50] sm:$0xff] %vm273_vm0, %v5236_v0  ;;  %287 = vst.msk [vmem:[#allocation2 + $0x60] sm:$0xff] %vm273_vm0, %v5236_v0  ;;  %v4205_v33 = vld [vmem:[%s5455_s9 + $0x60] sm:$0xff]   ;;  %v4206_v38 = vld [vmem:[%s5455_s9 + $0x68] sm:$0xff]   ;;  %v4172_v43 = vunpack.c.l.bf16 %v4203_v31  ;;  %v4173_v44 = vunpack.c.h.bf16 %v4203_v31  ;;  %v4176_v46 = vunpack.c.l.bf16 %v4204_v32  ;;  %v4177_v47 = vunpack.c.h.bf16 %v4204_v32  ;;  %s3842_s13 = sshll.u32 %s6214_s28, 4  ;;  %s3829_s17 = scalar_lea.sflag [#allocation5], %s5451_s14  ;;  %s6708_s13 = int_to_ptr.vmem [resolvable:$true] %s3842_s13 }
  0x71   : > { %288 = vst.msk [vmem:[#allocation2 + $0x68] sm:$0xff] %vm273_vm0, %v5236_v0  ;;  %290 = vst.msk [vmem:[#allocation2 + $0x78] sm:$0xff] %vm273_vm0, %v5236_v0  ;;  %v4207_v39 = vld [vmem:[%s5455_s9 + $0x70] sm:$0xff]   ;;  %v4208_v40 = vld [vmem:[%s5455_s9 + $0x78] sm:$0xff]   ;;  %v4180_v48 = vunpack.c.l.bf16 %v4205_v33  ;;  %v4181_v49 = vunpack.c.h.bf16 %v4205_v33  ;;  %v4184_v50 = vunpack.c.l.bf16 %v4206_v38  ;;  %v4185_v51 = vunpack.c.h.bf16 %v4206_v38  ;;  %s5159_s7 = scalar_lea.vmem %s6708_s13, 4096  ;;  %p6803_p0 = scmp.ne.s32.totalorder %s6790_s23, 0 }
  0x72   : > { %289 = vst.msk [vmem:[#allocation2 + $0x70] sm:$0x3] %vm276_vm1, %v5236_v0  ;;  %292 = vst.msk [vmem:[#allocation2 + $0x88] sm:$0x3] %vm276_vm1, %v5236_v0  ;;  %v476_v3 = vld [vmem:[#allocation2 + $0x1] sm:$0xff]  ;;  %v5062_v45 = vld [vmem:[#allocation6] sm:$0xff]   ;;  %v4188_v52 = vunpack.c.l.bf16 %v4207_v39  ;;  %v4189_v53 = vunpack.c.h.bf16 %v4207_v39  ;;  %v4192_v56 = vunpack.c.l.bf16 %v4208_v40  ;;  %v4193_v57 = vunpack.c.h.bf16 %v4208_v40  ;;  %p5160_p11 = scmp.ne.s32.totalorder %s6708_s13, %s5159_s7 }
  0x73   : > { %291 = vst.msk [vmem:[#allocation2 + $0x80] sm:$0xff] %vm273_vm0, %v5236_v0  ;;  %293 = vst.msk [vmem:[#allocation2 + $0x90] sm:$0xff] %vm273_vm0, %v5236_v0  ;;  %v477_v4 = vld [vmem:[#allocation2 + $0x9] sm:$0xff]  ;;  %4417 = vmatprep.subr.bf16.mxu1 %v5062_v45  ;;  %v5064_v24 = vld [vmem:[#allocation6 + $0x10] sm:$0xff]   ;;  %s5237_s6 = smov [#allocation9]  }
  0x74   : > { %294 = vst.msk [vmem:[#allocation2 + $0x98] sm:$0xff] %vm273_vm0, %v5236_v0  ;;  %296 = vst.msk [vmem:[#allocation2 + $0xa8] sm:$0xff] %vm273_vm0, %v5236_v0  ;;  %v508_v6 = vpack.c.bf16 %v477_v4, %v476_v3  ;;  %v426_v39 = vld [vmem:[#allocation2] sm:$0xff]  ;;  %v427_v40 = vld [vmem:[#allocation2 + $0x8] sm:$0xff]  ;;  %p5161_p2 = pnand %p5160_p11, %p6803_p0  ;;  %s5163_s8 = sshll.u32 %s5237_s6, 4  ;;  %s5164_s8 = int_to_ptr.vmem [resolvable:$false] %s5163_s8 }
  0x75   : > { %295 = vst.msk [vmem:[#allocation2 + $0xa0] sm:$0x3] %vm276_vm1, %v5236_v0  ;;  %298 = vst.msk [vmem:[#allocation2 + $0xb8] sm:$0x3] %vm276_vm1, %v5236_v0  ;;  %s5165_s9 = scalar_lea.vmem %s5164_s8, 8192  ;;  %p5166_p7 = scmp.lt.s32.totalorder %s6708_s13, %s5164_s8 }
  0x76   : > { %297 = vst.msk [vmem:[#allocation2 + $0xb0] sm:$0xff] %vm273_vm0, %v5236_v0  ;;  %299 = vst.msk [vmem:[#allocation2 + $0xc0] sm:$0xff] %vm273_vm0, %v5236_v0  ;;  %4385 = vmatprep.mubr.msk.bf16.mxu1 %vm273_vm0, %v508_v6  ;;  %p5162_p3 = pneg %p5161_p2  ;;  %p5167_p9 = scmp.lt.s32.totalorder %s5165_s9, %s5159_s7 }
  0x77   : > { %300 = vst.msk [vmem:[#allocation2 + $0xc8] sm:$0xff] %vm273_vm0, %v5236_v0  ;;  %302 = vst.msk [vmem:[#allocation2 + $0xd8] sm:$0xff] %vm273_vm0, %v5236_v0 }
  0x78   : > { %301 = vst.msk [vmem:[#allocation2 + $0xd0] sm:$0x3] %vm276_vm1, %v5236_v0  ;;  %304 = vst.msk [vmem:[#allocation2 + $0xe8] sm:$0x3] %vm276_vm1, %v5236_v0  ;;  %p5168_p12 = por %p5167_p9, %p5166_p7 }
  0x79   : > { %303 = vst.msk [vmem:[#allocation2 + $0xe0] sm:$0xff] %vm273_vm0, %v5236_v0  ;;  %305 = vst.msk [vmem:[#allocation2 + $0xf0] sm:$0xff] %vm273_vm0, %v5236_v0 }
  0x7a   : > { %306 = vst.msk [vmem:[#allocation2 + $0xf8] sm:$0xff] %vm273_vm0, %v5236_v0  ;;  %308 = vst.msk [vmem:[#allocation2 + $0x108] sm:$0xff] %vm273_vm0, %v5236_v0  ;;  %p5169_p1 = pnand %p5168_p12, %p5162_p3 }
  0x7b   : > { %307 = vst.msk [vmem:[#allocation2 + $0x100] sm:$0x3] %vm276_vm1, %v5236_v0  ;;  %310 = vst.msk [vmem:[#allocation2 + $0x118] sm:$0x3] %vm276_vm1, %v5236_v0 }
  0x7c   : > { %309 = vst.msk [vmem:[#allocation2 + $0x110] sm:$0xff] %vm273_vm0, %v5236_v0  ;;  %311 = vst.msk [vmem:[#allocation2 + $0x120] sm:$0xff] %vm273_vm0, %v5236_v0 }
  0x7d   : > { %312 = vst.msk [vmem:[#allocation2 + $0x128] sm:$0xff] %vm273_vm0, %v5236_v0  ;;  %314 = vst.msk [vmem:[#allocation2 + $0x138] sm:$0xff] %vm273_vm0, %v5236_v0 }
  0x7e   : > { %313 = vst.msk [vmem:[#allocation2 + $0x130] sm:$0x3] %vm276_vm1, %v5236_v0  ;;  %316 = vst.msk [vmem:[#allocation2 + $0x148] sm:$0x3] %vm276_vm1, %v5236_v0 }
  0x7f   : > { %315 = vst.msk [vmem:[#allocation2 + $0x140] sm:$0xff] %vm273_vm0, %v5236_v0  ;;  %317 = vst.msk [vmem:[#allocation2 + $0x150] sm:$0xff] %vm273_vm0, %v5236_v0 }
  0x80   : > { %318 = vst.msk [vmem:[#allocation2 + $0x158] sm:$0xff] %vm273_vm0, %v5236_v0  ;;  %320 = vst.msk [vmem:[#allocation2 + $0x168] sm:$0xff] %vm273_vm0, %v5236_v0 }
  0x81   : > { %319 = vst.msk [vmem:[#allocation2 + $0x160] sm:$0x3] %vm276_vm1, %v5236_v0  ;;  %322 = vst.msk [vmem:[#allocation2 + $0x178] sm:$0x3] %vm276_vm1, %v5236_v0 }
  0x82   : > { %321 = vst.msk [vmem:[#allocation2 + $0x170] sm:$0xff] %vm273_vm0, %v5236_v0  ;;  %323 = vst.msk [vmem:[#allocation2 + $0x180] sm:$0xff] %vm273_vm0, %v5236_v0 }
  0x83   : > { %324 = vst.msk [vmem:[#allocation2 + $0x188] sm:$0xff] %vm273_vm0, %v5236_v0  ;;  %326 = vst.msk [vmem:[#allocation2 + $0x198] sm:$0xff] %vm273_vm0, %v5236_v0 }
  0x84   : > { %325 = vst.msk [vmem:[#allocation2 + $0x190] sm:$0x3] %vm276_vm1, %v5236_v0  ;;  %328 = vst.msk [vmem:[#allocation2 + $0x1a8] sm:$0x3] %vm276_vm1, %v5236_v0 }
  0x85   : > { %327 = vst.msk [vmem:[#allocation2 + $0x1a0] sm:$0xff] %vm273_vm0, %v5236_v0  ;;  %394 = vst.msk [vmem:[#allocation2 + $0x19] sm:$0xff] %vm273_vm0, %v4132_v7  ;;  %v5575_v0 = vld [vmem:[#allocation6 + $0x30] sm:$0xff]  }
  0x86   : > { %395 = vst.msk [vmem:[#allocation2 + $0x21] sm:$0xff] %vm273_vm0, %v4133_v8  ;;  %396 = vst.msk [vmem:[#allocation2 + $0x31] sm:$0xff] %vm273_vm0, %v4136_v13 }
  0x87   : > { %397 = vst.msk [vmem:[#allocation2 + $0x39] sm:$0xff] %vm273_vm0, %v4137_v14  ;;  %398 = vst.msk [vmem:[#allocation2 + $0x49] sm:$0xff] %vm273_vm0, %v4140_v15 }
  0x88   : > { %399 = vst.msk [vmem:[#allocation2 + $0x51] sm:$0xff] %vm273_vm0, %v4141_v16  ;;  %400 = vst.msk [vmem:[#allocation2 + $0x61] sm:$0xff] %vm273_vm0, %v4144_v20 }
  0x89   : > { %401 = vst.msk [vmem:[#allocation2 + $0x69] sm:$0xff] %vm273_vm0, %v4145_v21  ;;  %402 = vst.msk [vmem:[#allocation2 + $0x79] sm:$0xff] %vm273_vm0, %v4148_v22 }
  0x8a   : > { %403 = vst.msk [vmem:[#allocation2 + $0x81] sm:$0xff] %vm273_vm0, %v4149_v23  ;;  %404 = vst.msk [vmem:[#allocation2 + $0x91] sm:$0xff] %vm273_vm0, %v4152_v27 }
  0x8b   : > { %405 = vst.msk [vmem:[#allocation2 + $0x99] sm:$0xff] %vm273_vm0, %v4153_v28  ;;  %406 = vst.msk [vmem:[#allocation2 + $0xa9] sm:$0xff] %vm273_vm0, %v4156_v29 }
  0x8c   : > { %407 = vst.msk [vmem:[#allocation2 + $0xb1] sm:$0xff] %vm273_vm0, %v4157_v30  ;;  %408 = vst.msk [vmem:[#allocation2 + $0xc1] sm:$0xff] %vm273_vm0, %v4160_v34  ;;  %v478_v54 = vld [vmem:[#allocation2 + $0x19] sm:$0xff] }
  0x8d   : > { %409 = vst.msk [vmem:[#allocation2 + $0xc9] sm:$0xff] %vm273_vm0, %v4161_v35  ;;  %410 = vst.msk [vmem:[#allocation2 + $0xd9] sm:$0xff] %vm273_vm0, %v4164_v36  ;;  %v479_v55 = vld [vmem:[#allocation2 + $0x21] sm:$0xff]  ;;  %v1555_v59 = vld [vmem:[#allocation2 + $0x31] sm:$0xff] }
  0x8e   : > { %411 = vst.msk [vmem:[#allocation2 + $0xe1] sm:$0xff] %vm273_vm0, %v4165_v37  ;;  %412 = vst.msk [vmem:[#allocation2 + $0xf1] sm:$0xff] %vm273_vm0, %v4168_v41  ;;  %v509_v58 = vpack.c.bf16 %v479_v55, %v478_v54  ;;  %v1556_v60 = vld [vmem:[#allocation2 + $0x39] sm:$0xff]  ;;  %v482_v61 = vld [vmem:[#allocation2 + $0x49] sm:$0xff] }
  0x8f   : > { %413 = vst.msk [vmem:[#allocation2 + $0xf9] sm:$0xff] %vm273_vm0, %v4169_v42  ;;  %414 = vst.msk [vmem:[#allocation2 + $0x109] sm:$0xff] %vm273_vm0, %v4172_v43  ;;  %v5573_v62 = vpack.c.bf16 %v1556_v60, %v1555_v59  ;;  %v483_v63 = vld [vmem:[#allocation2 + $0x51] sm:$0xff]  ;;  %v1559_v2 = vld [vmem:[#allocation2 + $0x61] sm:$0xff] }
  0x90   : > { %415 = vst.msk [vmem:[#allocation2 + $0x111] sm:$0xff] %vm273_vm0, %v4173_v44  ;;  %416 = vst.msk [vmem:[#allocation2 + $0x121] sm:$0xff] %vm273_vm0, %v4176_v46  ;;  %4386 = vmatmul.mubr.msk.bf16.vlgmr.msra.gmra.mrb[0].mxu1 %vm273_vm0, %v509_v58  ;;  %4521 = vmatprep.mubr.msk.bf16.mxu0 %vm273_vm0, %v509_v58  ;;  %v5577_v1 = vpack.c.bf16 %v483_v63, %v482_v61  ;;  %v1560_v3 = vld [vmem:[#allocation2 + $0x69] sm:$0xff]  ;;  %v486_v4 = vld [vmem:[#allocation2 + $0x79] sm:$0xff] }
  0x91   : > { %417 = vst.msk [vmem:[#allocation2 + $0x129] sm:$0xff] %vm273_vm0, %v4177_v47  ;;  %418 = vst.msk [vmem:[#allocation2 + $0x139] sm:$0xff] %vm273_vm0, %v4180_v48  ;;  %4418 = vmatpush3.bf16.msra.mxu1 %v5062_v45  ;;  %4522 = vmatmul.mubr.msk.bf16.vlgmr.msra.gmra.mrb[0].mxu0 %vm273_vm0, %v5573_v62  ;;  %v487_v5 = vld [vmem:[#allocation2 + $0x81] sm:$0xff]  ;;  %v5587_v6 = vpack.c.bf16 %v1560_v3, %v1559_v2  ;;  %v1563_v8 = vld [vmem:[#allocation2 + $0x91] sm:$0xff]  ;;  %v458_v45 = vpack.c.bf16 %v427_v40, %v426_v39 }
  0x92   : > { %419 = vst.msk [vmem:[#allocation2 + $0x141] sm:$0xff] %vm273_vm0, %v4181_v49  ;;  %420 = vst.msk [vmem:[#allocation2 + $0x151] sm:$0xff] %vm273_vm0, %v4184_v50  ;;  %4389 = vmatprep.mubr.msk.bf16.mxu1 %vm273_vm0, %v5573_v62  ;;  %4554 = vmatpush3.bf16.msra.mxu0 %v5520_v9  ;;  %v5589_v7 = vpack.c.bf16 %v487_v5, %v486_v4  ;;  %v1564_v9 = vld [vmem:[#allocation2 + $0x99] sm:$0xff]  ;;  %v490_v10 = vld [vmem:[#allocation2 + $0xa9] sm:$0xff] }
  0x93   : > { %421 = vst.msk [vmem:[#allocation2 + $0x159] sm:$0xff] %vm273_vm0, %v4185_v51  ;;  %422 = vst.msk [vmem:[#allocation2 + $0x169] sm:$0xff] %vm273_vm0, %v4188_v52  ;;  %4525 = vmatprep.mubr.msk.bf16.mxu0 %vm273_vm0, %v5577_v1  ;;  %4587 = vmatprep.subr.bf16.mxu0 %v5575_v0  ;;  %v491_v11 = vld [vmem:[#allocation2 + $0xb1] sm:$0xff]  ;;  %v5599_v12 = vpack.c.bf16 %v1564_v9, %v1563_v8  ;;  %v1567_v14 = vld [vmem:[#allocation2 + $0xc1] sm:$0xff] }
  0x94   : > { %423 = vst.msk [vmem:[#allocation2 + $0x171] sm:$0xff] %vm273_vm0, %v4189_v53  ;;  %424 = vst.msk [vmem:[#allocation2 + $0x181] sm:$0xff] %vm273_vm0, %v4192_v56  ;;  %v5601_v13 = vpack.c.bf16 %v491_v11, %v490_v10  ;;  %v1568_v15 = vld [vmem:[#allocation2 + $0xc9] sm:$0xff]  ;;  %v494_v16 = vld [vmem:[#allocation2 + $0xd9] sm:$0xff]  ;;  %4451 = vmatprep.subr.bf16.mxu1 %v5064_v24 }
  0x95   : > { %425 = vst.msk [vmem:[#allocation2 + $0x189] sm:$0xff] %vm273_vm0, %v4193_v57  ;;  %v495_v17 = vld [vmem:[#allocation2 + $0xe1] sm:$0xff]  ;;  %v5611_v18 = vpack.c.bf16 %v1568_v15, %v1567_v14  ;;  %v1571_v20 = vld [vmem:[#allocation2 + $0xf1] sm:$0xff] }
  0x96   : > { %v5613_v19 = vpack.c.bf16 %v495_v17, %v494_v16  ;;  %v1572_v21 = vld [vmem:[#allocation2 + $0xf9] sm:$0xff]  ;;  %v498_v22 = vld [vmem:[#allocation2 + $0x109] sm:$0xff] }
  0x97   : > { %v499_v23 = vld [vmem:[#allocation2 + $0x111] sm:$0xff]  ;;  %v5623_v25 = vpack.c.bf16 %v1572_v21, %v1571_v20  ;;  %v1575_v27 = vld [vmem:[#allocation2 + $0x121] sm:$0xff] }
  0x98   : > { %4390 = vmatmul.mubr.msk.bf16.gmra.mrb[4].mxu1 %vm273_vm0, %v5577_v1  ;;  %v5625_v26 = vpack.c.bf16 %v499_v23, %v498_v22  ;;  %v1576_v28 = vld [vmem:[#allocation2 + $0x129] sm:$0xff]  ;;  %v502_v29 = vld [vmem:[#allocation2 + $0x139] sm:$0xff] }
  0x99   : > { %4393 = vmatprep.mubr.msk.bf16.mxu1 %vm273_vm0, %v5587_v6  ;;  %4526 = vmatmul.mubr.msk.bf16.gmra.mrb[4].mxu0 %vm273_vm0, %v5587_v6  ;;  %v503_v30 = vld [vmem:[#allocation2 + $0x141] sm:$0xff]  ;;  %v5635_v31 = vpack.c.bf16 %v1576_v28, %v1575_v27  ;;  %v1579_v33 = vld [vmem:[#allocation2 + $0x151] sm:$0xff] }
  0x9a   : > { %4529 = vmatprep.mubr.msk.bf16.mxu0 %vm273_vm0, %v5589_v7  ;;  %v5637_v32 = vpack.c.bf16 %v503_v30, %v502_v29  ;;  %v1580_v34 = vld [vmem:[#allocation2 + $0x159] sm:$0xff]  ;;  %v506_v35 = vld [vmem:[#allocation2 + $0x169] sm:$0xff] }
  0x9b   : > { %v507_v36 = vld [vmem:[#allocation2 + $0x171] sm:$0xff]  ;;  %v5647_v37 = vpack.c.bf16 %v1580_v34, %v1579_v33  ;;  %v1583_v41 = vld [vmem:[#allocation2 + $0x181] sm:$0xff] }
  0x9c   : > { %v5649_v38 = vpack.c.bf16 %v507_v36, %v506_v35  ;;  %v1584_v42 = vld [vmem:[#allocation2 + $0x189] sm:$0xff]  ;;  %v1851_v43 = vld [vmem:[#allocation2 + $0x1a] sm:$0xff]  ;;  %v1853_v52 = vld [vmem:[#allocation2 + $0x32] sm:$0xff] }
  0x9d   : > { %v1852_v44 = vld [vmem:[#allocation2 + $0x22] sm:$0xff]  ;;  %v5659_v46 = vpack.c.bf16 %v1584_v42, %v1583_v41  ;;  %v428_v48 = vld [vmem:[#allocation2 + $0x18] sm:$0xff]  ;;  %v430_v50 = vld [vmem:[#allocation2 + $0x30] sm:$0xff] }
  0x9e   : > { %v5661_v47 = vpack.c.bf16 %v1852_v44, %v1851_v43  ;;  %v429_v49 = vld [vmem:[#allocation2 + $0x20] sm:$0xff]  ;;  %v431_v51 = vld [vmem:[#allocation2 + $0x38] sm:$0xff]  ;;  %v1855_v55 = vld [vmem:[#allocation2 + $0x4a] sm:$0xff] }
  0x9f   : > { %v1854_v53 = vld [vmem:[#allocation2 + $0x3a] sm:$0xff]  ;;  %v5670_v54 = vpack.c.bf16 %v429_v49, %v428_v48  ;;  %v1856_v56 = vld [vmem:[#allocation2 + $0x52] sm:$0xff]  ;;  %v5672_v57 = vpack.c.bf16 %v431_v51, %v430_v50  ;;  %v5676_v59 = vld [vmem:[#allocation6 + $0x18] sm:$0xff]  }
  0xa0   : > { %4394 = vmatmul.mubr.msk.bf16.gmra.mrb[8].mxu1 %vm273_vm0, %v5589_v7  ;;  %v5674_v58 = vpack.c.bf16 %v1854_v53, %v1853_v52  ;;  %v5678_v60 = vpack.c.bf16 %v1856_v56, %v1855_v55  ;;  %v5682_v61 = vld [vmem:[#allocation6 + $0x38] sm:$0xff]   ;;  %v433_v2 = vld [vmem:[#allocation2 + $0x50] sm:$0xff]  ;;  %v434_v3 = vld [vmem:[#allocation2 + $0x60] sm:$0xff] }
  0xa1   : > { %4397 = vmatprep.mubr.msk.bf16.mxu1 %vm273_vm0, %v5599_v12  ;;  %4530 = vmatmul.mubr.msk.bf16.gmra.mrb[8].mxu0 %vm273_vm0, %v5599_v12  ;;  %v432_v63 = vld [vmem:[#allocation2 + $0x48] sm:$0xff]  ;;  %v1859_v10 = vld [vmem:[#allocation2 + $0x7a] sm:$0xff]  ;;  %v438_v20 = vld [vmem:[#allocation2 + $0x90] sm:$0xff] }
  0xa2   : > { %4533 = vmatprep.mubr.msk.bf16.mxu0 %vm273_vm0, %v5601_v13  ;;  %v435_v4 = vld [vmem:[#allocation2 + $0x68] sm:$0xff]  ;;  %v5692_v9 = vpack.c.bf16 %v433_v2, %v432_v63  ;;  %v437_v17 = vld [vmem:[#allocation2 + $0x80] sm:$0xff]  ;;  %v439_v21 = vld [vmem:[#allocation2 + $0x98] sm:$0xff] }
  0xa3   : > { %v1857_v5 = vld [vmem:[#allocation2 + $0x62] sm:$0xff]  ;;  %v1858_v8 = vld [vmem:[#allocation2 + $0x6a] sm:$0xff]  ;;  %v5695_v14 = vpack.c.bf16 %v435_v4, %v434_v3  ;;  %v1861_v22 = vld [vmem:[#allocation2 + $0x92] sm:$0xff]  ;;  %v5711_v29 = vpack.c.bf16 %v439_v21, %v438_v20 }
  0xa4   : > { %v1860_v11 = vld [vmem:[#allocation2 + $0x82] sm:$0xff]  ;;  %v5697_v15 = vpack.c.bf16 %v1858_v8, %v1857_v5  ;;  %v1862_v23 = vld [vmem:[#allocation2 + $0x9a] sm:$0xff]  ;;  %v1863_v27 = vld [vmem:[#allocation2 + $0xaa] sm:$0xff] }
  0xa5   : > { %v5699_v16 = vpack.c.bf16 %v1860_v11, %v1859_v10  ;;  %v1864_v28 = vld [vmem:[#allocation2 + $0xb2] sm:$0xff]  ;;  %v5713_v30 = vpack.c.bf16 %v1862_v23, %v1861_v22  ;;  %v440_v34 = vld [vmem:[#allocation2 + $0xa8] sm:$0xff]  ;;  %v442_v36 = vld [vmem:[#allocation2 + $0xc0] sm:$0xff] }
  0xa6   : > { %v5715_v33 = vpack.c.bf16 %v1864_v28, %v1863_v27  ;;  %v441_v35 = vld [vmem:[#allocation2 + $0xb0] sm:$0xff]  ;;  %v443_v39 = vld [vmem:[#allocation2 + $0xc8] sm:$0xff]  ;;  %v1867_v43 = vld [vmem:[#allocation2 + $0xda] sm:$0xff] }
  0xa7   : > { %v1865_v40 = vld [vmem:[#allocation2 + $0xc2] sm:$0xff]  ;;  %v1866_v41 = vld [vmem:[#allocation2 + $0xca] sm:$0xff]  ;;  %v5725_v42 = vpack.c.bf16 %v441_v35, %v440_v34  ;;  %v444_v50 = vld [vmem:[#allocation2 + $0xd8] sm:$0xff] }
  0xa8   : > { %4398 = vmatmul.mubr.msk.bf16.gmra.mrb[12].mxu1 %vm273_vm0, %v5601_v13  ;;  %v1868_v44 = vld [vmem:[#allocation2 + $0xe2] sm:$0xff]  ;;  %v5729_v48 = vpack.c.bf16 %v1866_v41, %v1865_v40  ;;  %v446_v52 = vld [vmem:[#allocation2 + $0xf0] sm:$0xff]  ;;  %v447_v53 = vld [vmem:[#allocation2 + $0xf8] sm:$0xff] }
  0xa9   : > { %4401 = vmatprep.mubr.msk.bf16.mxu1 %vm273_vm0, %v5611_v18  ;;  %4534 = vmatmul.mubr.msk.bf16.gmra.mrb[12].mxu0 %vm273_vm0, %v5611_v18  ;;  %v5731_v49 = vpack.c.bf16 %v1868_v44, %v1867_v43  ;;  %v445_v51 = vld [vmem:[#allocation2 + $0xe0] sm:$0xff]  ;;  %v1869_v55 = vld [vmem:[#allocation2 + $0xf2] sm:$0xff]  ;;  %v1871_v2 = vld [vmem:[#allocation2 + $0x10a] sm:$0xff]  ;;  %v5743_v4 = vpack.c.bf16 %v447_v53, %v446_v52 }
  0xaa   : > { %4537 = vmatprep.mubr.msk.bf16.mxu0 %vm273_vm0, %v5613_v19  ;;  %v1870_v56 = vld [vmem:[#allocation2 + $0xfa] sm:$0xff]  ;;  %v5741_v63 = vpack.c.bf16 %v445_v51, %v444_v50  ;;  %v1872_v3 = vld [vmem:[#allocation2 + $0x112] sm:$0xff]  ;;  %v448_v10 = vld [vmem:[#allocation2 + $0x108] sm:$0xff] }
  0xab   : > { %v5745_v5 = vpack.c.bf16 %v1870_v56, %v1869_v55  ;;  %v5747_v8 = vpack.c.bf16 %v1872_v3, %v1871_v2  ;;  %v449_v11 = vld [vmem:[#allocation2 + $0x110] sm:$0xff]  ;;  %v1873_v20 = vld [vmem:[#allocation2 + $0x122] sm:$0xff]  ;;  %v1875_v23 = vld [vmem:[#allocation2 + $0x13a] sm:$0xff] }
  0xac   : > { %v1874_v21 = vld [vmem:[#allocation2 + $0x12a] sm:$0xff]  ;;  %v5757_v22 = vpack.c.bf16 %v449_v11, %v448_v10  ;;  %v1876_v27 = vld [vmem:[#allocation2 + $0x142] sm:$0xff]  ;;  %v455_v41 = vld [vmem:[#allocation2 + $0x158] sm:$0xff] }
  0xad   : > { %v5761_v34 = vpack.c.bf16 %v1874_v21, %v1873_v20  ;;  %v5763_v35 = vpack.c.bf16 %v1876_v27, %v1875_v23  ;;  %v454_v40 = vld [vmem:[#allocation2 + $0x150] sm:$0xff]  ;;  %v1878_v44 = vld [vmem:[#allocation2 + $0x15a] sm:$0xff]  ;;  %v456_v2 = vld [vmem:[#allocation2 + $0x168] sm:$0xff] }
  0xae   : > { %v1877_v43 = vld [vmem:[#allocation2 + $0x152] sm:$0xff]  ;;  %v1879_v51 = vld [vmem:[#allocation2 + $0x16a] sm:$0xff]  ;;  %v5775_v53 = vpack.c.bf16 %v455_v41, %v454_v40  ;;  %v957_v10 = vld [vmem:[#allocation2 + $0x2] sm:$0xff] }
  0xaf   : > { %v1880_v52 = vld [vmem:[#allocation2 + $0x172] sm:$0xff]  ;;  %v5777_v55 = vpack.c.bf16 %v1878_v44, %v1877_v43  ;;  %v958_v11 = vld [vmem:[#allocation2 + $0xa] sm:$0xff] }
  0xb0   : > { %4402 = vmatmul.mubr.msk.bf16.gmra.mrb[16].mxu1 %vm273_vm0, %v5613_v19  ;;  %v5779_v56 = vpack.c.bf16 %v1880_v52, %v1879_v51  ;;  %v457_v3 = vld [vmem:[#allocation2 + $0x170] sm:$0xff]  ;;  %v989_v21 = vpack.c.bf16 %v958_v11, %v957_v10  ;;  %v6004_v52 = vld [vmem:[%s6778_s2] ss:$0 sm:$0xff] }
  0xb1   : > { %4405 = vmatprep.mubr.msk.bf16.mxu1 %vm273_vm0, %v5623_v25  ;;  %4538 = vmatmul.mubr.msk.bf16.gmra.mrb[16].mxu0 %vm273_vm0, %v5623_v25  ;;  %v5789_v20 = vpack.c.bf16 %v457_v3, %v456_v2  ;;  %v5067_v27 = vld [vmem:[#allocation6 + $0x40] sm:$0xff]  }
  0xb2   : > { %4541 = vmatprep.mubr.msk.bf16.mxu0 %vm273_vm0, %v5625_v26 }
  0xb8   : > { %4406 = vmatmul.mubr.msk.bf16.gmra.mrb[20].mxu1 %vm273_vm0, %v5625_v26 }
  0xb9   : > { %4409 = vmatprep.mubr.msk.bf16.mxu1 %vm273_vm0, %v5635_v31  ;;  %4542 = vmatmul.mubr.msk.bf16.gmra.mrb[20].mxu0 %vm273_vm0, %v5635_v31 }
  0xba   : > { %4545 = vmatprep.mubr.msk.bf16.mxu0 %vm273_vm0, %v5637_v32 }
  0xc0   : > { %4410 = vmatmul.mubr.msk.bf16.gmra.mrb[24].mxu1 %vm273_vm0, %v5637_v32 }
  0xc1   : > { %4413 = vmatprep.mubr.msk.bf16.mxu1 %vm273_vm0, %v5647_v37  ;;  %4546 = vmatmul.mubr.msk.bf16.gmra.mrb[24].mxu0 %vm273_vm0, %v5647_v37 }
  0xc2   : > { %4549 = vmatprep.mubr.msk.bf16.mxu0 %vm273_vm0, %v5649_v38 }
  0xc8   : > { %4414 = vmatmul.mubr.msk.bf16.gmra.mrb[28].mxu1 %vm273_vm0, %v5649_v38 }
  0xc9   : > { %4419 = vmatprep.mubr.msk.bf16.mxu1 %vm273_vm0, %v458_v45  ;;  %4550 = vmatmul.mubr.msk.bf16.gmra.mrb[28].mxu0 %vm273_vm0, %v5659_v46  ;;  %v5727_v45 = vpack.c.bf16 %v443_v39, %v442_v36  ;;  %v452_v36 = vld [vmem:[#allocation2 + $0x138] sm:$0xff]  ;;  %v453_v39 = vld [vmem:[#allocation2 + $0x140] sm:$0xff] }
  0xca   : > { %4555 = vmatprep.mubr.msk.bf16.mxu0 %vm273_vm0, %v5661_v47  ;;  %v5773_v50 = vpack.c.bf16 %v453_v39, %v452_v36  ;;  %v2180_v36 = vld [vmem:[#allocation2 + $0x198] sm:$0xff]  ;;  %v2181_v39 = vld [vmem:[#allocation2 + $0x1a0] sm:$0xff] }
  0xcb   : > { %v2197_v40 = vpack.c.bf16 %v2181_v39, %v2180_v36 }
  0xd0   : > { %4420 = vmatmul.mubr.msk.bf16.vlgmr.msra.gmra.mrb[0].mxu1 %vm273_vm0, %v5670_v54 }
  0xd1   : > { %4423 = vmatprep.mubr.msk.bf16.mxu1 %vm273_vm0, %v5672_v57  ;;  %4452 = vmatpush3.bf16.msra.mxu1 %v5064_v24 }
  0xd2   : > { %4556 = vmatmul.mubr.msk.bf16.vlgmr.msra.gmra.mrb[0].mxu0 %vm273_vm0, %v5674_v58  ;;  %4485 = vmatprep.subr.bf16.mxu1 %v5676_v59 }
  0xd3   : > { %4588 = vmatpush3.bf16.msra.mxu0 %v5575_v0  ;;  %4559 = vmatprep.mubr.msk.bf16.mxu0 %vm273_vm0, %v5678_v60  ;;  %v436_v0 = vld [vmem:[#allocation2 + $0x78] sm:$0xff] }
  0xd4   : > { %4621 = vmatprep.subr.bf16.mxu0 %v5682_v61  ;;  %v5709_v24 = vpack.c.bf16 %v437_v17, %v436_v0  ;;  %v450_v0 = vld [vmem:[#allocation2 + $0x120] sm:$0xff]  ;;  %v451_v17 = vld [vmem:[#allocation2 + $0x128] sm:$0xff] }
  0xd5   : > { %v5759_v28 = vpack.c.bf16 %v451_v17, %v450_v0  ;;  %v1881_v0 = vld [vmem:[#allocation2 + $0x182] sm:$0xff]  ;;  %v1882_v17 = vld [vmem:[#allocation2 + $0x18a] sm:$0xff] }
  0xd6   : > { %v5791_v23 = vpack.c.bf16 %v1882_v17, %v1881_v0 }
  0xd8   : > { %4424 = vmatmul.mubr.msk.bf16.gmra.mrb[4].mxu1 %vm273_vm0, %v5692_v9 }
  0xd9   : > { %4427 = vmatprep.mubr.msk.bf16.mxu1 %vm273_vm0, %v5695_v14 }
  0xda   : > { %4560 = vmatmul.mubr.msk.bf16.gmra.mrb[4].mxu0 %vm273_vm0, %v5697_v15 }
  0xdb   : > { %4563 = vmatprep.mubr.msk.bf16.mxu0 %vm273_vm0, %v5699_v16 }
  0xe0   : > { %4428 = vmatmul.mubr.msk.bf16.gmra.mrb[8].mxu1 %vm273_vm0, %v5709_v24 }
  0xe1   : > { %4431 = vmatprep.mubr.msk.bf16.mxu1 %vm273_vm0, %v5711_v29 }
  0xe2   : > { %4564 = vmatmul.mubr.msk.bf16.gmra.mrb[8].mxu0 %vm273_vm0, %v5713_v30 }
  0xe3   : > { %4567 = vmatprep.mubr.msk.bf16.mxu0 %vm273_vm0, %v5715_v33 }
  0xe8   : > { %4432 = vmatmul.mubr.msk.bf16.gmra.mrb[12].mxu1 %vm273_vm0, %v5725_v42 }
  0xe9   : > { %4435 = vmatprep.mubr.msk.bf16.mxu1 %vm273_vm0, %v5727_v45 }
  0xea   : > { %4568 = vmatmul.mubr.msk.bf16.gmra.mrb[12].mxu0 %vm273_vm0, %v5729_v48 }
  0xeb   : > { %4571 = vmatprep.mubr.msk.bf16.mxu0 %vm273_vm0, %v5731_v49 }
  0xf0   : > { %4436 = vmatmul.mubr.msk.bf16.gmra.mrb[16].mxu1 %vm273_vm0, %v5741_v63 }
  0xf1   : > { %4439 = vmatprep.mubr.msk.bf16.mxu1 %vm273_vm0, %v5743_v4 }
  0xf2   : > { %4572 = vmatmul.mubr.msk.bf16.gmra.mrb[16].mxu0 %vm273_vm0, %v5745_v5 }
  0xf3   : > { %4575 = vmatprep.mubr.msk.bf16.mxu0 %vm273_vm0, %v5747_v8 }
  0xf8   : > { %4440 = vmatmul.mubr.msk.bf16.gmra.mrb[20].mxu1 %vm273_vm0, %v5757_v22 }
  0xf9   : > { %4443 = vmatprep.mubr.msk.bf16.mxu1 %vm273_vm0, %v5759_v28 }
  0xfa   : > { %4576 = vmatmul.mubr.msk.bf16.gmra.mrb[20].mxu0 %vm273_vm0, %v5761_v34 }
  0xfb   : > { %4579 = vmatprep.mubr.msk.bf16.mxu0 %vm273_vm0, %v5763_v35 }
 0x100   : > { %4444 = vmatmul.mubr.msk.bf16.gmra.mrb[24].mxu1 %vm273_vm0, %v5773_v50 }
 0x101   : > { %4447 = vmatprep.mubr.msk.bf16.mxu1 %vm273_vm0, %v5775_v53 }
 0x102   : > { %4580 = vmatmul.mubr.msk.bf16.gmra.mrb[24].mxu0 %vm273_vm0, %v5777_v55 }
 0x103   : > { %4583 = vmatprep.mubr.msk.bf16.mxu0 %vm273_vm0, %v5779_v56 }
 0x108   : > { %4448 = vmatmul.mubr.msk.bf16.gmra.mrb[28].mxu1 %vm273_vm0, %v5789_v20 }
 0x109   : > { %4453 = vmatprep.mubr.msk.bf16.mxu1 %vm273_vm0, %v989_v21 }
 0x10a   : > { %4584 = vmatmul.mubr.msk.bf16.gmra.mrb[28].mxu0 %vm273_vm0, %v5791_v23 }
 0x10b   : > { %4589 = vmatprep.mubr.msk.bf16.mxu0 %vm273_vm0, %v5672_v57 }
 0x110   : > { %4454 = vmatmul.mubr.msk.bf16.vlgmr.msra.gmra.mrb[0].mxu1 %vm273_vm0, %v5661_v47  ;;  %v2178_v47 = vld [vmem:[#allocation2 + $0x180] sm:$0xff] }
 0x111   : > { %4457 = vmatprep.mubr.msk.bf16.mxu1 %vm273_vm0, %v5674_v58  ;;  %4486 = vmatpush3.bf16.msra.mxu1 %v5676_v59  ;;  %v2179_v59 = vld [vmem:[#allocation2 + $0x188] sm:$0xff] }
 0x112   : > { %4590 = vmatmul.mubr.msk.bf16.vlgmr.msra.gmra.mrb[0].mxu0 %vm273_vm0, %v5692_v9 }
 0x113   : > { %4622 = vmatpush3.bf16.msra.mxu0 %v5682_v61  ;;  %4593 = vmatprep.mubr.msk.bf16.mxu0 %vm273_vm0, %v5695_v14  ;;  %v2196_v61 = vpack.c.bf16 %v2179_v59, %v2178_v47 }
 0x114   : > { %4655 = vmatprep.subr.bf16.mxu0 %v5067_v27 }
 0x118   : > { %4458 = vmatmul.mubr.msk.bf16.gmra.mrb[4].mxu1 %vm273_vm0, %v5678_v60 }
 0x119   : > { %4461 = vmatprep.mubr.msk.bf16.mxu1 %vm273_vm0, %v5697_v15 }
 0x11a   : > { %4594 = vmatmul.mubr.msk.bf16.gmra.mrb[4].mxu0 %vm273_vm0, %v5709_v24 }
 0x11b   : > { %4597 = vmatprep.mubr.msk.bf16.mxu0 %vm273_vm0, %v5711_v29 }
 0x120   : > { %4462 = vmatmul.mubr.msk.bf16.gmra.mrb[8].mxu1 %vm273_vm0, %v5699_v16 }
 0x121   : > { %4465 = vmatprep.mubr.msk.bf16.mxu1 %vm273_vm0, %v5713_v30 }
 0x122   : > { %4598 = vmatmul.mubr.msk.bf16.gmra.mrb[8].mxu0 %vm273_vm0, %v5725_v42 }
 0x123   : > { %4601 = vmatprep.mubr.msk.bf16.mxu0 %vm273_vm0, %v5727_v45 }
 0x128   : > { %4466 = vmatmul.mubr.msk.bf16.gmra.mrb[12].mxu1 %vm273_vm0, %v5715_v33 }
 0x129   : > { %4469 = vmatprep.mubr.msk.bf16.mxu1 %vm273_vm0, %v5729_v48 }
 0x12a   : > { %4602 = vmatmul.mubr.msk.bf16.gmra.mrb[12].mxu0 %vm273_vm0, %v5741_v63 }
 0x12b   : > { %4605 = vmatprep.mubr.msk.bf16.mxu0 %vm273_vm0, %v5743_v4 }
 0x130   : > { %4470 = vmatmul.mubr.msk.bf16.gmra.mrb[16].mxu1 %vm273_vm0, %v5731_v49 }
 0x131   : > { %4473 = vmatprep.mubr.msk.bf16.mxu1 %vm273_vm0, %v5745_v5 }
 0x132   : > { %4606 = vmatmul.mubr.msk.bf16.gmra.mrb[16].mxu0 %vm273_vm0, %v5757_v22 }
 0x133   : > { %4609 = vmatprep.mubr.msk.bf16.mxu0 %vm273_vm0, %v5759_v28 }
 0x138   : > { %4474 = vmatmul.mubr.msk.bf16.gmra.mrb[20].mxu1 %vm273_vm0, %v5747_v8 }
 0x139   : > { %4477 = vmatprep.mubr.msk.bf16.mxu1 %vm273_vm0, %v5761_v34 }
 0x13a   : > { %4610 = vmatmul.mubr.msk.bf16.gmra.mrb[20].mxu0 %vm273_vm0, %v5773_v50 }
 0x13b   : > { %4613 = vmatprep.mubr.msk.bf16.mxu0 %vm273_vm0, %v5775_v53 }
 0x140   : > { %4478 = vmatmul.mubr.msk.bf16.gmra.mrb[24].mxu1 %vm273_vm0, %v5763_v35 }
 0x141   : > { %4481 = vmatprep.mubr.msk.bf16.mxu1 %vm273_vm0, %v5777_v55 }
 0x142   : > { %4614 = vmatmul.mubr.msk.bf16.gmra.mrb[24].mxu0 %vm273_vm0, %v5789_v20 }
 0x143   : > { %4617 = vmatprep.mubr.msk.bf16.mxu0 %vm273_vm0, %v2196_v61 }
 0x148   : > { %4482 = vmatmul.mubr.msk.bf16.gmra.mrb[28].mxu1 %vm273_vm0, %v5779_v56 }
 0x149   : > { %4487 = vmatprep.mubr.msk.bf16.mxu1 %vm273_vm0, %v5670_v54 }
 0x14a   : > { %4618 = vmatmul.mubr.msk.bf16.gmra.mrb[28].mxu0 %vm273_vm0, %v2197_v40 }
 0x14b   : > { %4623 = vmatprep.mubr.msk.bf16.mxu0 %vm273_vm0, %v5573_v62  ;;  %v2478_v62 = vld [vmem:[#allocation2 + $0x199] sm:$0xff] }
 0x150   : > { %4488 = vmatmul.mubr.msk.bf16.vlgmr.msra.gmra.mrb[0].mxu1 %vm273_vm0, %v5672_v57 }
 0x151   : > { %4491 = vmatprep.mubr.msk.bf16.mxu1 %vm273_vm0, %v5692_v9 }
 0x152   : > { %4624 = vmatmul.mubr.msk.bf16.vlgmr.msra.gmra.mrb[0].mxu0 %vm273_vm0, %v5577_v1  ;;  %v2479_v1 = vld [vmem:[#allocation2 + $0x1a1] sm:$0xff] }
 0x153   : > { %4656 = vmatpush3.bf16.msra.mxu0 %v5067_v27  ;;  %4627 = vmatprep.mubr.msk.bf16.mxu0 %vm273_vm0, %v5587_v6  ;;  %v2495_v6 = vpack.c.bf16 %v2479_v1, %v2478_v62 }
 0x158   : > { %4492 = vmatmul.mubr.msk.bf16.gmra.mrb[4].mxu1 %vm273_vm0, %v5695_v14 }
 0x159   : > { %4495 = vmatprep.mubr.msk.bf16.mxu1 %vm273_vm0, %v5709_v24 }
 0x15a   : > { %4628 = vmatmul.mubr.msk.bf16.gmra.mrb[4].mxu0 %vm273_vm0, %v5589_v7  ;;  %v5068_v7 = vld [vmem:[#allocation8] sm:$0xff]  }
 0x15b   : > { %4631 = vmatprep.mubr.msk.bf16.mxu0 %vm273_vm0, %v5599_v12  ;;  %4689 = vmatprep.subr.bf16.mxu1 %v5068_v7  ;;  %v5069_v12 = vld [vmem:[#allocation8 + $0x8] sm:$0xff]  }
 0x15c   : > { %4690 = vmatpush3.bf16.msra.mxu1 %v5068_v7 }
 0x15d   : > { %4691 = vmatprep.subr.bf16.mxu1 %v5069_v12 }
 0x160   : > { %4496 = vmatmul.mubr.msk.bf16.gmra.mrb[8].mxu1 %vm273_vm0, %v5711_v29 }
 0x161   : > { %4499 = vmatprep.mubr.msk.bf16.mxu1 %vm273_vm0, %v5725_v42  ;;  %4692 = vmatpush3.bf16.msra.mxu1 %v5069_v12 }
 0x162   : > { %4632 = vmatmul.mubr.msk.bf16.gmra.mrb[8].mxu0 %vm273_vm0, %v5601_v13  ;;  %v2776_v13 = vld [vmem:[#allocation2 + $0x19a] sm:$0xff] }
 0x163   : > { %4635 = vmatprep.mubr.msk.bf16.mxu0 %vm273_vm0, %v5611_v18  ;;  %v2777_v18 = vld [vmem:[#allocation2 + $0x1a2] sm:$0xff] }
 0x168   : > { %4500 = vmatmul.mubr.msk.bf16.gmra.mrb[12].mxu1 %vm273_vm0, %v5727_v45 }
 0x169   : > { %4503 = vmatprep.mubr.msk.bf16.mxu1 %vm273_vm0, %v5741_v63 }
 0x16a   : > { %4636 = vmatmul.mubr.msk.bf16.gmra.mrb[12].mxu0 %vm273_vm0, %v5613_v19  ;;  %v2793_v19 = vpack.c.bf16 %v2777_v18, %v2776_v13 }
 0x16b   : > { %4639 = vmatprep.mubr.msk.bf16.mxu0 %vm273_vm0, %v5623_v25  ;;  %v5070_v25 = vld [vmem:[#allocation8 + $0x10] sm:$0xff]  }
 0x16c   : > { %4693 = vmatprep.subr.bf16.mxu1 %v5070_v25 }
 0x16d   : > { %4694 = vmatpush3.bf16.msra.mxu1 %v5070_v25 }
 0x170   : > { %4504 = vmatmul.mubr.msk.bf16.gmra.mrb[16].mxu1 %vm273_vm0, %v5743_v4 }
 0x171   : > { %4507 = vmatprep.mubr.msk.bf16.mxu1 %vm273_vm0, %v5757_v22 }
 0x172   : > { %4640 = vmatmul.mubr.msk.bf16.gmra.mrb[16].mxu0 %vm273_vm0, %v5625_v26  ;;  %v5071_v26 = vld [vmem:[#allocation8 + $0x18] sm:$0xff]  }
 0x173   : > { %4643 = vmatprep.mubr.msk.bf16.mxu0 %vm273_vm0, %v5635_v31  ;;  %4695 = vmatprep.subr.bf16.mxu1 %v5071_v26  ;;  %v5072_v31 = vld [vmem:[#allocation8 + $0x20] sm:$0xff]  }
 0x174   : > { %4696 = vmatpush3.bf16.msra.mxu1 %v5071_v26 }
 0x175   : > { %4697 = vmatprep.subr.bf16.mxu1 %v5072_v31 }
 0x178   : > { %4508 = vmatmul.mubr.msk.bf16.gmra.mrb[20].mxu1 %vm273_vm0, %v5759_v28 }
 0x179   : > { %4511 = vmatprep.mubr.msk.bf16.mxu1 %vm273_vm0, %v5773_v50  ;;  %4698 = vmatpush3.bf16.msra.mxu1 %v5072_v31 }
 0x17a   : > { %4644 = vmatmul.mubr.msk.bf16.gmra.mrb[20].mxu0 %vm273_vm0, %v5637_v32 }
 0x17b   : > { %4647 = vmatprep.mubr.msk.bf16.mxu0 %vm273_vm0, %v5647_v37 }
 0x180   : > { %4512 = vmatmul.mubr.msk.bf16.gmra.mrb[24].mxu1 %vm273_vm0, %v5775_v53 }
 0x181   : > { %4515 = vmatprep.mubr.msk.bf16.mxu1 %vm273_vm0, %v5789_v20 }
 0x182   : > { %4648 = vmatmul.mubr.msk.bf16.gmra.mrb[24].mxu0 %vm273_vm0, %v5649_v38 }
 0x183   : > { %4651 = vmatprep.mubr.msk.bf16.mxu0 %vm273_vm0, %v5659_v46 }
 0x188   : > { %4516 = vmatmul.mubr.msk.bf16.gmra.mrb[28].mxu1 %vm273_vm0, %v2196_v61 }
 0x18a   : > { %4652 = vmatmul.mubr.msk.bf16.gmra.mrb[28].mxu0 %vm273_vm0, %v2495_v6 }
 0x18b   : > { %4657 = vmatprep.mubr.msk.bf16.mxu0 %vm273_vm0, %v5674_v58 }
 0x192   : > { %4658 = vmatmul.mubr.msk.bf16.vlgmr.msra.gmra.mrb[0].mxu0 %vm273_vm0, %v5678_v60 }
 0x193   : > { %4661 = vmatprep.mubr.msk.bf16.mxu0 %vm273_vm0, %v5697_v15 }
 0x19a   : > { %4662 = vmatmul.mubr.msk.bf16.gmra.mrb[4].mxu0 %vm273_vm0, %v5699_v16 }
 0x19b   : > { %4665 = vmatprep.mubr.msk.bf16.mxu0 %vm273_vm0, %v5713_v30 }
 0x1a2   : > { %4666 = vmatmul.mubr.msk.bf16.gmra.mrb[8].mxu0 %vm273_vm0, %v5715_v33 }
 0x1a3   : > { %4669 = vmatprep.mubr.msk.bf16.mxu0 %vm273_vm0, %v5729_v48 }
 0x1aa   : > { %4670 = vmatmul.mubr.msk.bf16.gmra.mrb[12].mxu0 %vm273_vm0, %v5731_v49 }
 0x1ab   : > { %4673 = vmatprep.mubr.msk.bf16.mxu0 %vm273_vm0, %v5745_v5 }
 0x1b2   : > { %4674 = vmatmul.mubr.msk.bf16.gmra.mrb[16].mxu0 %vm273_vm0, %v5747_v8 }
 0x1b3   : > { %4677 = vmatprep.mubr.msk.bf16.mxu0 %vm273_vm0, %v5761_v34 }
 0x1ba   : > { %4678 = vmatmul.mubr.msk.bf16.gmra.mrb[20].mxu0 %vm273_vm0, %v5763_v35 }
 0x1bb   : > { %4681 = vmatprep.mubr.msk.bf16.mxu0 %vm273_vm0, %v5777_v55 }
 0x1c2   : > { %4682 = vmatmul.mubr.msk.bf16.gmra.mrb[24].mxu0 %vm273_vm0, %v5779_v56 }
 0x1c3   : > { %4685 = vmatprep.mubr.msk.bf16.mxu0 %vm273_vm0, %v5791_v23 }
 0x1ca   : > { %4686 = vmatmul.mubr.msk.bf16.gmra.mrb[28].mxu0 %vm273_vm0, %v2793_v19 }
 0x223   : > { %v4489_v32 = vpop.f32.mrb[0].mxu1 }
 0x224   : > { %v1394_v37 = vpop.f32.mrb[1].mxu1 }
 0x225   : > { %v4490_v38 = vpop.f32.mrb[2].mxu1 }
 0x226   : > { %v1397_v46 = vpop.f32.mrb[3].mxu1 }
 0x22b   : > { %v4493_v54 = vpop.f32.mrb[4].mxu1 }
 0x22c   : > { %v1410_v57 = vpop.f32.mrb[5].mxu1 }
 0x22d   : > { %v4494_v58 = vpop.f32.mrb[6].mxu1 }
 0x22e   : > { %v1413_v60 = vpop.f32.mrb[7].mxu1 }
 0x233   : > { %v5953_v9 = vpop.f32.mrb[8].mxu1 }
 0x234   : > { %v5955_v14 = vpop.f32.mrb[9].mxu1 }
 0x235   : > { %v5957_v15 = vpop.f32.mrb[10].mxu1 }
 0x236   : > { %v5959_v16 = vpop.f32.mrb[11].mxu1 }
 0x23b   : > { %v5961_v24 = vpop.f32.mrb[12].mxu1 }
 0x23c   : > { %v5963_v29 = vpop.f32.mrb[13].mxu1 }
 0x23d   : > { %v5965_v30 = vpop.f32.mrb[14].mxu1 }
 0x23e   : > { %v5967_v33 = vpop.f32.mrb[15].mxu1 }
 0x243   : > { %v5969_v42 = vpop.f32.mrb[16].mxu1 }
 0x244   : > { %v5971_v45 = vpop.f32.mrb[17].mxu1 }
 0x245   : > { %v5973_v48 = vpop.f32.mrb[18].mxu1 }
 0x246   : > { %v5975_v49 = vpop.f32.mrb[19].mxu1 }
 0x24b   : > { %v5977_v63 = vpop.f32.mrb[20].mxu1 }
 0x24c   : > { %v5979_v4 = vpop.f32.mrb[21].mxu1 }
 0x24d   : > { %v5981_v5 = vpop.f32.mrb[22].mxu1 }
 0x24e   : > { %v5983_v8 = vpop.f32.mrb[23].mxu1 }
 0x253   : > { %v5985_v22 = vpop.f32.mrb[24].mxu1 }
 0x254   : > { %v5987_v28 = vpop.f32.mrb[25].mxu1 }
 0x255   : > { %v5989_v34 = vpop.f32.mrb[26].mxu1 }
 0x256   : > { %v5991_v35 = vpop.f32.mrb[27].mxu1 }
 0x25b   : > { %v5993_v41 = vpop.f32.mrb[28].mxu1 }
 0x25c   : > { %v5995_v43 = vpop.f32.mrb[29].mxu1 }
 0x25d   : > { %v5997_v44 = vpop.f32.mrb[30].mxu1 }
 0x25e   : > { %v5999_v50 = vpop.f32.mrb[31].mxu1 }
 0x265   : > { %v4659_v51 = vpop.f32.mrb[0].mxu0 }
 0x266   : > { %v4731_v53 = vadd.f32 %v4659_v51, %v4489_v32  ;;  %v2885_v55 = vpop.f32.mrb[1].mxu0 }
 0x267   : > { %v4732_v56 = vadd.f32 %v2885_v55, %v1394_v37  ;;  %v4660_v2 = vpop.f32.mrb[2].mxu0 }
 0x268   : > { %v3053_v3 = vadd.f32 %v4731_v53, %v6004_v52  ;;  %v4733_v10 = vadd.f32 %v4660_v2, %v4490_v38  ;;  %v2888_v11 = vpop.f32.mrb[3].mxu0 }
 0x269   : > { %v3051_v0 = vadd.f32 %v4732_v56, %v6004_v52  ;;  %v4734_v17 = vadd.f32 %v2888_v11, %v1397_v46 }
 0x26a   : > { %v3054_v20 = vadd.f32 %v4733_v10, %v6004_v52  ;;  %v3085_v23 = vmax.f32 %v3053_v3, 0.0 }
 0x26b   : > { %v3052_v21 = vadd.f32 %v4734_v17, %v6004_v52  ;;  %v3083_v47 = vmax.f32 %v3051_v0, 0.0 }
 0x26c   : > { %v3086_v27 = vmax.f32 %v3054_v20, 0.0 }
 0x26d   : > { %v3084_v59 = vmax.f32 %v3052_v21, 0.0  ;;  %v4663_v61 = vpop.f32.mrb[4].mxu0 }
 0x26e   : > { %v3116_v36 = vpack.c.bf16 %v3086_v27, %v3085_v23  ;;  %v4735_v39 = vadd.f32 %v4663_v61, %v4493_v54  ;;  %v2901_v40 = vpop.f32.mrb[5].mxu0 }
 0x26f   : > { %v3115_v62 = vpack.c.bf16 %v3084_v59, %v3083_v47  ;;  %v4736_v1 = vadd.f32 %v2901_v40, %v1410_v57  ;;  %v4664_v6 = vpop.f32.mrb[6].mxu0 }
 0x270   : > { %v3057_v7 = vadd.f32 %v4735_v39, %v6004_v52  ;;  %v4737_v12 = vadd.f32 %v4664_v6, %v4494_v58  ;;  %v2904_v13 = vpop.f32.mrb[7].mxu0 }
 0x271   : > { %v3055_v18 = vadd.f32 %v4736_v1, %v6004_v52  ;;  %v4738_v19 = vadd.f32 %v2904_v13, %v1413_v60  ;;  %4699 = vmatprep.mubr.msk.bf16.mxu1 %vm3178_vm2, %v3115_v62 }
 0x272   : > { %v3058_v25 = vadd.f32 %v4737_v12, %v6004_v52  ;;  %4700 = vmatmul.mubr.msk.bf16.vlgmr.msra.gmra.mrb[32].mxu1 %vm3178_vm2, %v3116_v36  ;;  %v3089_v31 = vmax.f32 %v3057_v7, 0.0 }
 0x273   : > { %v3056_v26 = vadd.f32 %v4738_v19, %v6004_v52  ;;  %v3087_v37 = vmax.f32 %v3055_v18, 0.0 }
 0x274   : > { %v3090_v32 = vmax.f32 %v3058_v25, 0.0 }
 0x275   : > { %v3088_v38 = vmax.f32 %v3056_v26, 0.0  ;;  %v4667_v46 = vpop.f32.mrb[8].mxu0 }
 0x276   : > { %v3118_v54 = vpack.c.bf16 %v3090_v32, %v3089_v31  ;;  %v4739_v57 = vadd.f32 %v4667_v46, %v5953_v9  ;;  %v2917_v58 = vpop.f32.mrb[9].mxu0 }
 0x277   : > { %v3117_v51 = vpack.c.bf16 %v3088_v38, %v3087_v37  ;;  %v4740_v60 = vadd.f32 %v2917_v58, %v5955_v14  ;;  %v4668_v53 = vpop.f32.mrb[10].mxu0 }
 0x278   : > { %v3061_v55 = vadd.f32 %v4739_v57, %v6004_v52  ;;  %v4741_v56 = vadd.f32 %v4668_v53, %v5957_v15  ;;  %v2920_v2 = vpop.f32.mrb[11].mxu0 }
 0x279   : > { %v3059_v3 = vadd.f32 %v4740_v60, %v6004_v52  ;;  %v4742_v10 = vadd.f32 %v2920_v2, %v5959_v16  ;;  %4703 = vmatprep.mubr.msk.bf16.mxu1 %vm3178_vm2, %v3117_v51 }
 0x27a   : > { %v3062_v11 = vadd.f32 %v4741_v56, %v6004_v52  ;;  %4704 = vmatmul.mubr.msk.bf16.gmra.mrb[36].mxu1 %vm3178_vm2, %v3118_v54  ;;  %v3093_v0 = vmax.f32 %v3061_v55, 0.0 }
 0x27b   : > { %v3060_v9 = vadd.f32 %v4742_v10, %v6004_v52  ;;  %v3091_v17 = vmax.f32 %v3059_v3, 0.0 }
 0x27c   : > { %v3094_v14 = vmax.f32 %v3062_v11, 0.0 }
 0x27d   : > { %v3092_v20 = vmax.f32 %v3060_v9, 0.0  ;;  %v4671_v21 = vpop.f32.mrb[12].mxu0 }
 0x27e   : > { %v3120_v23 = vpack.c.bf16 %v3094_v14, %v3093_v0  ;;  %v4743_v15 = vadd.f32 %v4671_v21, %v5961_v24  ;;  %v2933_v27 = vpop.f32.mrb[13].mxu0 }
 0x27f   : > { %v3119_v47 = vpack.c.bf16 %v3092_v20, %v3091_v17  ;;  %v4744_v16 = vadd.f32 %v2933_v27, %v5963_v29  ;;  %v4672_v59 = vpop.f32.mrb[14].mxu0 }
 0x280   : > { %v3065_v61 = vadd.f32 %v4743_v15, %v6004_v52  ;;  %v4745_v36 = vadd.f32 %v4672_v59, %v5965_v30  ;;  %v2936_v39 = vpop.f32.mrb[15].mxu0 }
 0x281   : > { %v3063_v40 = vadd.f32 %v4744_v16, %v6004_v52  ;;  %v4746_v62 = vadd.f32 %v2936_v39, %v5967_v33  ;;  %4707 = vmatprep.mubr.msk.bf16.mxu1 %vm3178_vm2, %v3119_v47 }
 0x282   : > { %v3066_v1 = vadd.f32 %v4745_v36, %v6004_v52  ;;  %4708 = vmatmul.mubr.msk.bf16.gmra.mrb[40].mxu1 %vm3178_vm2, %v3120_v23  ;;  %v3097_v6 = vmax.f32 %v3065_v61, 0.0 }
 0x283   : > { %v3064_v24 = vadd.f32 %v4746_v62, %v6004_v52  ;;  %v3095_v7 = vmax.f32 %v3063_v40, 0.0 }
 0x284   : > { %v3098_v29 = vmax.f32 %v3066_v1, 0.0 }
 0x285   : > { %v3096_v12 = vmax.f32 %v3064_v24, 0.0  ;;  %v4675_v13 = vpop.f32.mrb[16].mxu0 }
 0x286   : > { %v3122_v18 = vpack.c.bf16 %v3098_v29, %v3097_v6  ;;  %v4747_v30 = vadd.f32 %v4675_v13, %v5969_v42  ;;  %v2949_v19 = vpop.f32.mrb[17].mxu0 }
 0x287   : > { %v3121_v25 = vpack.c.bf16 %v3096_v12, %v3095_v7  ;;  %v4748_v33 = vadd.f32 %v2949_v19, %v5971_v45  ;;  %v4676_v26 = vpop.f32.mrb[18].mxu0 }
 0x288   : > { %v3069_v31 = vadd.f32 %v4747_v30, %v6004_v52  ;;  %v4749_v32 = vadd.f32 %v4676_v26, %v5973_v48  ;;  %v2952_v37 = vpop.f32.mrb[19].mxu0 }
 0x289   : > { %v3067_v38 = vadd.f32 %v4748_v33, %v6004_v52  ;;  %v4750_v46 = vadd.f32 %v2952_v37, %v5975_v49  ;;  %4711 = vmatprep.mubr.msk.bf16.mxu1 %vm3178_vm2, %v3121_v25 }
 0x28a   : > { %v3070_v54 = vadd.f32 %v4749_v32, %v6004_v52  ;;  %4712 = vmatmul.mubr.msk.bf16.gmra.mrb[44].mxu1 %vm3178_vm2, %v3122_v18  ;;  %v3101_v57 = vmax.f32 %v3069_v31, 0.0 }
 0x28b   : > { %v3068_v42 = vadd.f32 %v4750_v46, %v6004_v52  ;;  %v3099_v58 = vmax.f32 %v3067_v38, 0.0 }
 0x28c   : > { %v3102_v45 = vmax.f32 %v3070_v54, 0.0 }
 0x28d   : > { %v3100_v51 = vmax.f32 %v3068_v42, 0.0  ;;  %v4679_v60 = vpop.f32.mrb[20].mxu0 }
 0x28e   : > { %v3124_v53 = vpack.c.bf16 %v3102_v45, %v3101_v57  ;;  %v4751_v48 = vadd.f32 %v4679_v60, %v5977_v63  ;;  %v2965_v55 = vpop.f32.mrb[21].mxu0 }
 0x28f   : > { %v3123_v56 = vpack.c.bf16 %v3100_v51, %v3099_v58  ;;  %v4752_v49 = vadd.f32 %v2965_v55, %v5979_v4  ;;  %v4680_v2 = vpop.f32.mrb[22].mxu0 }
 0x290   : > { %v3073_v3 = vadd.f32 %v4751_v48, %v6004_v52  ;;  %v4753_v10 = vadd.f32 %v4680_v2, %v5981_v5  ;;  %v2968_v11 = vpop.f32.mrb[23].mxu0 }
 0x291   : > { %v3071_v9 = vadd.f32 %v4752_v49, %v6004_v52  ;;  %v4754_v0 = vadd.f32 %v2968_v11, %v5983_v8  ;;  %4715 = vmatprep.mubr.msk.bf16.mxu1 %vm3178_vm2, %v3123_v56 }
 0x292   : > { %v3074_v14 = vadd.f32 %v4753_v10, %v6004_v52  ;;  %4716 = vmatmul.mubr.msk.bf16.gmra.mrb[48].mxu1 %vm3178_vm2, %v3124_v53  ;;  %v3105_v17 = vmax.f32 %v3073_v3, 0.0 }
 0x293   : > { %v3072_v63 = vadd.f32 %v4754_v0, %v6004_v52  ;;  %v3103_v20 = vmax.f32 %v3071_v9, 0.0 }
 0x294   : > { %v3106_v4 = vmax.f32 %v3074_v14, 0.0 }
 0x295   : > { %v3104_v21 = vmax.f32 %v3072_v63, 0.0  ;;  %v4683_v23 = vpop.f32.mrb[24].mxu0 }
 0x296   : > { %v3126_v15 = vpack.c.bf16 %v3106_v4, %v3105_v17  ;;  %v4755_v5 = vadd.f32 %v4683_v23, %v5985_v22  ;;  %v2981_v27 = vpop.f32.mrb[25].mxu0 }
 0x297   : > { %v3125_v47 = vpack.c.bf16 %v3104_v21, %v3103_v20  ;;  %v4756_v8 = vadd.f32 %v2981_v27, %v5987_v28  ;;  %v4684_v16 = vpop.f32.mrb[26].mxu0 }
 0x298   : > { %v3077_v59 = vadd.f32 %v4755_v5, %v6004_v52  ;;  %v4757_v61 = vadd.f32 %v4684_v16, %v5989_v34  ;;  %v2984_v36 = vpop.f32.mrb[27].mxu0 }
 0x299   : > { %v3075_v39 = vadd.f32 %v4756_v8, %v6004_v52  ;;  %v4758_v40 = vadd.f32 %v2984_v36, %v5991_v35  ;;  %4719 = vmatprep.mubr.msk.bf16.mxu1 %vm3178_vm2, %v3125_v47 }
 0x29a   : > { %v3078_v62 = vadd.f32 %v4757_v61, %v6004_v52  ;;  %4720 = vmatmul.mubr.msk.bf16.gmra.mrb[52].mxu1 %vm3178_vm2, %v3126_v15  ;;  %v3109_v1 = vmax.f32 %v3077_v59, 0.0 }
 0x29b   : > { %v3076_v22 = vadd.f32 %v4758_v40, %v6004_v52  ;;  %v3107_v24 = vmax.f32 %v3075_v39, 0.0 }
 0x29c   : > { %v3110_v28 = vmax.f32 %v3078_v62, 0.0 }
 0x29d   : > { %v3108_v6 = vmax.f32 %v3076_v22, 0.0  ;;  %v4687_v29 = vpop.f32.mrb[28].mxu0 }
 0x29e   : > { %v3128_v7 = vpack.c.bf16 %v3110_v28, %v3109_v1  ;;  %v4759_v34 = vadd.f32 %v4687_v29, %v5993_v41  ;;  %v2997_v12 = vpop.f32.mrb[29].mxu0 }
 0x29f   : > { %v3127_v13 = vpack.c.bf16 %v3108_v6, %v3107_v24  ;;  %v4760_v35 = vadd.f32 %v2997_v12, %v5995_v43  ;;  %v4688_v18 = vpop.f32.mrb[30].mxu0 }
 0x2a0   : > { %v3081_v30 = vadd.f32 %v4759_v34, %v6004_v52  ;;  %v4761_v19 = vadd.f32 %v4688_v18, %v5997_v44  ;;  %v3000_v25 = vpop.f32.mrb[31].mxu0  ;;  %v3388_v44 = vlaneseq }
 0x2a1   : > { %v3079_v33 = vadd.f32 %v4760_v35, %v6004_v52  ;;  %v4762_v26 = vadd.f32 %v3000_v25, %v5999_v50  ;;  %4723 = vmatprep.mubr.msk.bf16.mxu1 %vm3178_vm2, %v3127_v13  ;;  %v6081_v50 = vld [vmem:[%s6780_s4] ss:$0 sm:$0xff] }
 0x2a2   : > { %v3082_v31 = vadd.f32 %v4761_v19, %v6004_v52  ;;  %4724 = vmatmul.mubr.msk.bf16.gmra.mrb[56].mxu1 %vm3178_vm2, %v3128_v7  ;;  %v3113_v32 = vmax.f32 %v3081_v30, 0.0  ;;  %v6083_v42 = vand.u32 127, %v3388_v44 }
 0x2a3   : > { %v3080_v41 = vadd.f32 %v4762_v26, %v6004_v52  ;;  %v3111_v37 = vmax.f32 %v3079_v33, 0.0 }
 0x2a4   : > { %v3114_v43 = vmax.f32 %v3082_v31, 0.0  ;;  %vm3390_vm3 = vcmp.ge.s32.totalorder %v6083_v42, 15  ;;  %vm3391_vm4 = vcmp.lt.s32.totalorder %v6083_v42, 30  ;;  %vm3572_vm5 = vcmp.ge.s32.totalorder %v6083_v42, 30 }
 0x2a5   : > { %v3112_v38 = vmax.f32 %v3080_v41, 0.0  ;;  %vm3573_vm6 = vcmp.lt.s32.totalorder %v6083_v42, 45  ;;  %vm6099_vm9 = vmand %vm3390_vm3, %vm3391_vm4  ;;  %vm3722_vm11 = vcmp.ge.s32.totalorder %v6083_v42, 45  ;;  %vm3723_vm12 = vcmp.lt.s32.totalorder %v6083_v42, 60 }
 0x2a6   : > { %v3130_v46 = vpack.c.bf16 %v3114_v43, %v3113_v32  ;;  %vm6105_vm10 = vmand %vm3572_vm5, %vm3573_vm6  ;;  %vm3759_vm13 = vcmp.ge.s32.totalorder %v6083_v42, 60  ;;  %vm3760_vm14 = vcmp.lt.s32.totalorder %v6083_v42, 75 }
 0x2a7   : > { %v3129_v54 = vpack.c.bf16 %v3112_v38, %v3111_v37  ;;  %vm6160_vm15 = vmand %vm3722_vm11, %vm3723_vm12 }
 0x2a8   : > { %vm6176_vm0 = vmand %vm3759_vm13, %vm3760_vm14 }
 0x2a9   : > { %4727 = vmatprep.mubr.msk.bf16.mxu1 %vm3178_vm2, %v3129_v54 }
 0x2aa   : > { %4728 = vmatmul.mubr.msk.bf16.gmra.mrb[60].mxu1 %vm3178_vm2, %v3130_v46 }
 0x345   : > { %v4701_v57 = vpop.f32.mrb[32].mxu1 }
 0x346   : > { %v6086_v52 = vadd.f32 %v4701_v57, %v6081_v50  ;;  %v3261_v45 = vpop.f32.mrb[33].mxu1 }
 0x347   : > { %v3262_v58 = vadd.f32 %v6081_v50, %v3261_v45  ;;  %v4702_v51 = vpop.f32.mrb[34].mxu1 }
 0x348   : > { %v6092_v60 = vadd.f32 %v4702_v51, %v6081_v50  ;;  %v3264_v53 = vpop.f32.mrb[35].mxu1  ;;  %v3426_v55 = vrot.slane %v6086_v52, 1  ;;  %v3608_v56 = vrot.slane %v6086_v52, 7 }
 0x349   : > { %v3265_v48 = vadd.f32 %v6081_v50, %v3264_v53  ;;  %v3471_v10 = vrot.slane %v3262_v58, 1  ;;  %v3638_v11 = vrot.slane %v3262_v58, 7 }
 0x34a   : > { %v3427_v2 = vrot.slane %v6092_v60, 1  ;;  %v3575_v3 = vrot.slane %v6092_v60, 7 }
 0x34b   : > { %v3472_v0 = vrot.slane %v3265_v48, 1  ;;  %v3590_v14 = vrot.slane %v3265_v48, 7 }
 0x34c   : > { %v3428_v63 = vsel %vm3425_vm7, %v3426_v55, %v3427_v2  ;;  %v3672_v17 = vsel %vm3607_vm8, %v3575_v3, %v3608_v56  ;;  %v3522_v4 = vsel %vm3425_vm7, %v3427_v2, %v3426_v55  ;;  %v3609_v20 = vsel %vm3607_vm8, %v3608_v56, %v3575_v3 }
 0x34d   : > { %v3540_v21 = vsel %vm6099_vm9, %v3428_v63, %v3262_v58  ;;  %v3541_v23 = vsel %vm6099_vm9, %v3522_v4, %v3265_v48  ;;  %v4705_v15 = vpop.f32.mrb[36].mxu1  ;;  %v6118_v5 = vsel %vm3425_vm7, %v3471_v10, %v3472_v0  ;;  %v6121_v27 = vsel %vm3607_vm8, %v3590_v14, %v3638_v11 }
 0x34e   : > { %v6125_v47 = vsel %vm6105_vm10, %v3672_v17, %v3540_v21  ;;  %v6129_v8 = vsel %vm6105_vm10, %v3609_v20, %v3541_v23  ;;  %v6132_v16 = vadd.f32 %v4705_v15, %v6081_v50  ;;  %v3277_v59 = vpop.f32.mrb[37].mxu1  ;;  %v6135_v61 = vsel %vm3425_vm7, %v3472_v0, %v3471_v10 }
 0x34f   : > { %v3278_v36 = vadd.f32 %v6081_v50, %v3277_v59  ;;  %v4706_v39 = vpop.f32.mrb[38].mxu1  ;;  %v6139_v40 = vsel %vm3607_vm8, %v3638_v11, %v3590_v14 }
 0x350   : > { %v6142_v62 = vadd.f32 %v4706_v39, %v6081_v50  ;;  %v3280_v22 = vpop.f32.mrb[39].mxu1  ;;  %v3432_v28 = vrot.slane %v6132_v16, 1  ;;  %v3612_v24 = vrot.slane %v6132_v16, 7 }
 0x351   : > { %v3281_v1 = vadd.f32 %v6081_v50, %v3280_v22  ;;  %v3429_v7 = vrot.slane %v3278_v36, 1  ;;  %v3610_v34 = vrot.slane %v3278_v36, 7 }
 0x352   : > { %v3433_v6 = vrot.slane %v6142_v62, 1  ;;  %v3577_v29 = vrot.slane %v6142_v62, 7 }
 0x353   : > { %v3430_v12 = vrot.slane %v3281_v1, 1  ;;  %v3576_v13 = vrot.slane %v3281_v1, 7 }
 0x354   : > { %v3434_v35 = vsel %vm3425_vm7, %v3432_v28, %v3433_v6  ;;  %v3674_v18 = vsel %vm3607_vm8, %v3577_v29, %v3612_v24  ;;  %v6165_v19 = vsel %vm3425_vm7, %v3433_v6, %v3432_v28  ;;  %v6168_v25 = vsel %vm3607_vm8, %v3612_v24, %v3577_v29 }
 0x355   : > { %v3544_v33 = vsel %vm6099_vm9, %v3434_v35, %v3278_v36  ;;  %v6181_v31 = vsel %vm3425_vm7, %v3429_v7, %v3430_v12  ;;  %v3523_v41 = vsel %vm3425_vm7, %v3430_v12, %v3429_v7  ;;  %v3545_v32 = vsel %vm6099_vm9, %v6165_v19, %v3281_v1  ;;  %v4709_v43 = vpop.f32.mrb[40].mxu1 }
 0x356   : > { %v3694_v37 = vsel %vm6105_vm10, %v3674_v18, %v3544_v33  ;;  %v3542_v38 = vsel %vm6099_vm9, %v6181_v31, %v6086_v52  ;;  %v3543_v46 = vsel %vm6099_vm9, %v3523_v41, %v6092_v60  ;;  %v3611_v54 = vsel %vm3607_vm8, %v3610_v34, %v3576_v13  ;;  %v3293_v44 = vpop.f32.mrb[41].mxu1 }
 0x357   : > { %v3731_v42 = vsel %vm6160_vm15, %v3428_v63, %v3694_v37  ;;  %v3673_v57 = vsel %vm3607_vm8, %v3576_v13, %v3610_v34  ;;  %v3695_v45 = vsel %vm6105_vm10, %v6168_v25, %v3545_v32  ;;  %v6204_v58 = vadd.f32 %v4709_v43, %v6081_v50  ;;  %v4710_v52 = vpop.f32.mrb[42].mxu1 }
 0x358   : > { %v3768_v51 = vsel %vm6176_vm0, %v3672_v17, %v3731_v42  ;;  %v3732_v60 = vsel %vm6160_vm15, %v3522_v4, %v3695_v45  ;;  %v3294_v53 = vadd.f32 %v6081_v50, %v3293_v44  ;;  %v6212_v48 = vadd.f32 %v4710_v52, %v6081_v50  ;;  %v3296_v55 = vpop.f32.mrb[43].mxu1 }
 0x359   : > { %3800 = vst [vmem:[%s6214_s28 + $0x20] sm:$0xff] %v3768_v51  ;;  %v3769_v56 = vsel %vm6176_vm0, %v3609_v20, %v3732_v60  ;;  %v3438_v2 = vrot.slane %v6204_v58, 1  ;;  %v3616_v3 = vrot.slane %v6204_v58, 7  ;;  %v3297_v10 = vadd.f32 %v6081_v50, %v3296_v55 }
 0x35a   : > { %3801 = vst [vmem:[%s6214_s28 + $0x28] sm:$0xff] %v3769_v56  ;;  %v3435_v11 = vrot.slane %v3294_v53, 1  ;;  %v3614_v0 = vrot.slane %v3294_v53, 7  ;;  %v3439_v14 = vrot.slane %v6212_v48, 1  ;;  %v3579_v63 = vrot.slane %v6212_v48, 7 }
 0x35b   : > { %v3436_v17 = vrot.slane %v3297_v10, 1  ;;  %v3578_v4 = vrot.slane %v3297_v10, 7  ;;  %v3692_v21 = vsel %vm6105_vm10, %v3673_v57, %v3542_v38  ;;  %v3693_v20 = vsel %vm6105_vm10, %v3611_v54, %v3543_v46 }
 0x35c   : > { %v6230_v23 = vsel %vm3425_vm7, %v3438_v2, %v3439_v14  ;;  %v6233_v15 = vsel %vm3607_vm8, %v3579_v63, %v3616_v3  ;;  %v6236_v59 = vsel %vm3425_vm7, %v3439_v14, %v3438_v2  ;;  %v6239_v36 = vsel %vm3607_vm8, %v3616_v3, %v3579_v63 }
 0x35d   : > { %v3548_v39 = vsel %vm6099_vm9, %v6230_v23, %v3294_v53  ;;  %v6245_v22 = vsel %vm3425_vm7, %v3435_v11, %v3436_v17  ;;  %v6248_v1 = vsel %vm3425_vm7, %v3436_v17, %v3435_v11  ;;  %v3549_v28 = vsel %vm6099_vm9, %v6236_v59, %v3297_v10  ;;  %v4713_v24 = vpop.f32.mrb[44].mxu1 }
 0x35e   : > { %v3698_v6 = vsel %vm6105_vm10, %v6233_v15, %v3548_v39  ;;  %v3546_v29 = vsel %vm6099_vm9, %v6245_v22, %v6132_v16  ;;  %v3547_v7 = vsel %vm6099_vm9, %v6248_v1, %v6142_v62  ;;  %v6265_v34 = vsel %vm3607_vm8, %v3614_v0, %v3578_v4  ;;  %v3309_v12 = vpop.f32.mrb[45].mxu1 }
 0x35f   : > { %v3735_v13 = vsel %vm6160_vm15, %v3434_v35, %v3698_v6  ;;  %v6270_v33 = vsel %vm3607_vm8, %v3578_v4, %v3614_v0  ;;  %v3697_v16 = vsel %vm6105_vm10, %v6265_v34, %v3547_v7  ;;  %v3699_v62 = vsel %vm6105_vm10, %v6239_v36, %v3549_v28  ;;  %v4714_v32 = vpop.f32.mrb[46].mxu1 }
 0x360   : > { %v3772_v43 = vsel %vm6176_vm0, %v3674_v18, %v3735_v13  ;;  %v3696_v35 = vsel %vm6105_vm10, %v6270_v33, %v3546_v29  ;;  %v3734_v37 = vsel %vm6160_vm15, %v3523_v41, %v3697_v16  ;;  %v3736_v38 = vsel %vm6160_vm15, %v6165_v19, %v3699_v62  ;;  %v3312_v46 = vpop.f32.mrb[47].mxu1 }
 0x361   : > { %3804 = vst [vmem:[%s6214_s28 + $0x40] sm:$0xff] %v3772_v43  ;;  %v3733_v44 = vsel %vm6160_vm15, %v6181_v31, %v3696_v35  ;;  %v3771_v18 = vsel %vm6176_vm0, %v3611_v54, %v3734_v37  ;;  %v3773_v42 = vsel %vm6176_vm0, %v6168_v25, %v3736_v38  ;;  %v6298_v45 = vadd.f32 %v4713_v24, %v6081_v50 }
 0x362   : > { %v3770_v41 = vsel %vm6176_vm0, %v3673_v57, %v3733_v44  ;;  %3803 = vst [vmem:[%s6214_s28 + $0x38] sm:$0xff] %v3771_v18  ;;  %3805 = vst [vmem:[%s6214_s28 + $0x48] sm:$0xff] %v3773_v42  ;;  %v3310_v19 = vadd.f32 %v6081_v50, %v3309_v12  ;;  %v6306_v52 = vadd.f32 %v4714_v32, %v6081_v50 }
 0x363   : > { %v3313_v31 = vadd.f32 %v6081_v50, %v3312_v46  ;;  %3802 = vst [vmem:[%s6214_s28 + $0x30] sm:$0xff] %v3770_v41  ;;  %v3444_v54 = vrot.slane %v6298_v45, 1  ;;  %v3620_v25 = vrot.slane %v6298_v45, 7  ;;  %v3729_v51 = vsel %vm6160_vm15, %v6118_v5, %v3692_v21 }
 0x364   : > { %v3730_v57 = vsel %vm6160_vm15, %v6135_v61, %v3693_v20  ;;  %v3441_v60 = vrot.slane %v3310_v19, 1  ;;  %v3618_v53 = vrot.slane %v3310_v19, 7  ;;  %v3445_v55 = vrot.slane %v6306_v52, 1 }
 0x365   : > { %v3581_v56 = vrot.slane %v6306_v52, 7  ;;  %v3442_v2 = vrot.slane %v3313_v31, 1  ;;  %v3580_v3 = vrot.slane %v3313_v31, 7  ;;  %v4717_v10 = vpop.f32.mrb[48].mxu1  ;;  %v3766_v11 = vsel %vm6176_vm0, %v6121_v27, %v3729_v51 }
 0x366   : > { %v3767_v0 = vsel %vm6176_vm0, %v6139_v40, %v3730_v57  ;;  %v6327_v14 = vsel %vm3425_vm7, %v3444_v54, %v3445_v55  ;;  %v6333_v17 = vsel %vm3425_vm7, %v3445_v55, %v3444_v54  ;;  %v3325_v21 = vpop.f32.mrb[49].mxu1  ;;  %3798 = vst [vmem:[%s6214_s28 + $0x10] sm:$0xff] %v3766_v11  ;;  %v6395_v44 = vadd.f32 %v4717_v10, %v6081_v50 }
 0x367   : > { %v6330_v63 = vsel %vm3607_vm8, %v3581_v56, %v3620_v25  ;;  %v6336_v4 = vsel %vm3607_vm8, %v3620_v25, %v3581_v56  ;;  %3799 = vst [vmem:[%s6214_s28 + $0x18] sm:$0xff] %v3767_v0  ;;  %v3552_v20 = vsel %vm6099_vm9, %v6327_v14, %v3310_v19  ;;  %v6344_v39 = vsel %vm3425_vm7, %v3441_v60, %v3442_v2  ;;  %v4718_v6 = vpop.f32.mrb[50].mxu1 }
 0x368   : > { %v6347_v28 = vsel %vm3425_vm7, %v3442_v2, %v3441_v60  ;;  %v3553_v24 = vsel %vm6099_vm9, %v6333_v17, %v3313_v31  ;;  %v3702_v29 = vsel %vm6105_vm10, %v6330_v63, %v3552_v20  ;;  %v3550_v7 = vsel %vm6099_vm9, %v6344_v39, %v6204_v58  ;;  %v3328_v16 = vpop.f32.mrb[51].mxu1 }
 0x369   : > { %v3551_v12 = vsel %vm6099_vm9, %v6347_v28, %v6212_v48  ;;  %v3619_v13 = vsel %vm3607_vm8, %v3618_v53, %v3580_v3  ;;  %v3739_v62 = vsel %vm6160_vm15, %v6230_v23, %v3702_v29  ;;  %v3677_v32 = vsel %vm3607_vm8, %v3580_v3, %v3618_v53 }
 0x36a   : > { %v3701_v43 = vsel %vm6105_vm10, %v3619_v13, %v3551_v12  ;;  %v3703_v58 = vsel %vm6105_vm10, %v6336_v4, %v3553_v24  ;;  %v3776_v48 = vsel %vm6176_vm0, %v6233_v15, %v3739_v62  ;;  %v3700_v35 = vsel %vm6105_vm10, %v3677_v32, %v3550_v7 }
 0x36b   : > { %v3738_v23 = vsel %vm6160_vm15, %v6248_v1, %v3701_v43  ;;  %v3740_v37 = vsel %vm6160_vm15, %v6236_v59, %v3703_v58  ;;  %3808 = vst [vmem:[%s6214_s28 + $0x60] sm:$0xff] %v3776_v48  ;;  %v3737_v38 = vsel %vm6160_vm15, %v6245_v22, %v3700_v35  ;;  %v3326_v1 = vadd.f32 %v6081_v50, %v3325_v21 }
 0x36c   : > { %v3775_v15 = vsel %vm6176_vm0, %v6265_v34, %v3738_v23  ;;  %v3777_v46 = vsel %vm6176_vm0, %v6239_v36, %v3740_v37  ;;  %v3774_v59 = vsel %vm6176_vm0, %v6270_v33, %v3737_v38  ;;  %v6404_v22 = vadd.f32 %v4718_v6, %v6081_v50 }
 0x36d   : > { %3807 = vst [vmem:[%s6214_s28 + $0x58] sm:$0xff] %v3775_v15  ;;  %3809 = vst [vmem:[%s6214_s28 + $0x68] sm:$0xff] %v3777_v46  ;;  %v3329_v34 = vadd.f32 %v6081_v50, %v3328_v16  ;;  %v3450_v18 = vrot.slane %v6395_v44, 1  ;;  %v3624_v36 = vrot.slane %v6395_v44, 7  ;;  %v4721_v42 = vpop.f32.mrb[52].mxu1  ;;  %v3447_v41 = vrot.slane %v3326_v1, 1 }
 0x36e   : > { %3806 = vst [vmem:[%s6214_s28 + $0x50] sm:$0xff] %v3774_v59  ;;  %v3622_v19 = vrot.slane %v3326_v1, 7  ;;  %v3451_v31 = vrot.slane %v6404_v22, 1  ;;  %v3583_v33 = vrot.slane %v6404_v22, 7  ;;  %v3341_v54 = vpop.f32.mrb[53].mxu1  ;;  %v6413_v57 = vadd.f32 %v4721_v42, %v6081_v50 }
 0x36f   : > { %v3448_v25 = vrot.slane %v3329_v34, 1  ;;  %v3582_v51 = vrot.slane %v3329_v34, 7  ;;  %v6416_v60 = vadd.f32 %v6081_v50, %v3341_v54  ;;  %v4722_v53 = vpop.f32.mrb[54].mxu1 }
 0x370   : > { %v6419_v55 = vsel %vm3425_vm7, %v3450_v18, %v3451_v31  ;;  %v6422_v56 = vsel %vm3607_vm8, %v3583_v33, %v3624_v36  ;;  %v6425_v2 = vsel %vm3425_vm7, %v3451_v31, %v3450_v18  ;;  %v6428_v3 = vsel %vm3607_vm8, %v3624_v36, %v3583_v33  ;;  %v3344_v10 = vpop.f32.mrb[55].mxu1 }
 0x371   : > { %v3556_v11 = vsel %vm6099_vm9, %v6419_v55, %v3326_v1  ;;  %v6434_v0 = vsel %vm3425_vm7, %v3447_v41, %v3448_v25  ;;  %v6437_v21 = vsel %vm3425_vm7, %v3448_v25, %v3447_v41  ;;  %v3557_v20 = vsel %vm6099_vm9, %v6425_v2, %v3329_v34 }
 0x372   : > { %v3706_v24 = vsel %vm6105_vm10, %v6422_v56, %v3556_v11  ;;  %v3554_v6 = vsel %vm6099_vm9, %v6434_v0, %v6298_v45  ;;  %v3555_v29 = vsel %vm6099_vm9, %v6437_v21, %v6306_v52  ;;  %v3623_v7 = vsel %vm3607_vm8, %v3622_v19, %v3582_v51 }
 0x373   : > { %v3743_v12 = vsel %vm6160_vm15, %v6327_v14, %v3706_v24  ;;  %v6458_v16 = vsel %vm3607_vm8, %v3582_v51, %v3622_v19  ;;  %v3705_v45 = vsel %vm6105_vm10, %v3623_v7, %v3555_v29  ;;  %v3707_v62 = vsel %vm6105_vm10, %v6428_v3, %v3557_v20 }
 0x374   : > { %v3780_v52 = vsel %vm6176_vm0, %v6330_v63, %v3743_v12  ;;  %v3704_v43 = vsel %vm6105_vm10, %v6458_v16, %v3554_v6  ;;  %v3742_v14 = vsel %vm6160_vm15, %v6347_v28, %v3705_v45  ;;  %v3744_v58 = vsel %vm6160_vm15, %v6333_v17, %v3707_v62 }
 0x375   : > { %3812 = vst [vmem:[%s6214_s28 + $0x80] sm:$0xff] %v3780_v52  ;;  %v3741_v48 = vsel %vm6160_vm15, %v6344_v39, %v3704_v43  ;;  %v3779_v63 = vsel %vm6176_vm0, %v3619_v13, %v3742_v14  ;;  %v3781_v35 = vsel %vm6176_vm0, %v6336_v4, %v3744_v58  ;;  %v4725_v23 = vpop.f32.mrb[56].mxu1  ;;  %v6492_v17 = vadd.f32 %v4722_v53, %v6081_v50 }
 0x376   : > { %v3778_v28 = vsel %vm6176_vm0, %v3677_v32, %v3741_v48  ;;  %3811 = vst [vmem:[%s6214_s28 + $0x78] sm:$0xff] %v3779_v63  ;;  %3813 = vst [vmem:[%s6214_s28 + $0x88] sm:$0xff] %v3781_v35  ;;  %v3357_v37 = vpop.f32.mrb[57].mxu1  ;;  %v3345_v39 = vadd.f32 %v6081_v50, %v3344_v10  ;;  %v6496_v38 = vadd.f32 %v4725_v23, %v6081_v50  ;;  %v3456_v15 = vrot.slane %v6413_v57, 1 }
 0x377   : > { %3810 = vst [vmem:[%s6214_s28 + $0x70] sm:$0xff] %v3778_v28  ;;  %v4726_v13 = vpop.f32.mrb[58].mxu1  ;;  %v3628_v4 = vrot.slane %v6413_v57, 7  ;;  %v3453_v46 = vrot.slane %v6416_v60, 1  ;;  %v3626_v32 = vrot.slane %v6416_v60, 7  ;;  %v3457_v1 = vrot.slane %v6492_v17, 1 }
 0x378   : > { %v3360_v59 = vpop.f32.mrb[59].mxu1  ;;  %v3585_v34 = vrot.slane %v6492_v17, 7  ;;  %v3454_v18 = vrot.slane %v3345_v39, 1  ;;  %v3584_v36 = vrot.slane %v3345_v39, 7  ;;  %v3462_v42 = vrot.slane %v6496_v38, 1 }
 0x379   : > { %v3632_v41 = vrot.slane %v6496_v38, 7  ;;  %v3358_v19 = vadd.f32 %v6081_v50, %v3357_v37  ;;  %v6508_v31 = vadd.f32 %v4726_v13, %v6081_v50  ;;  %v3458_v33 = vsel %vm3425_vm7, %v3456_v15, %v3457_v1 }
 0x37a   : > { %v3682_v54 = vsel %vm3607_vm8, %v3585_v34, %v3628_v4  ;;  %v6513_v25 = vsel %vm3425_vm7, %v3453_v46, %v3454_v18  ;;  %v6516_v51 = vsel %vm3425_vm7, %v3454_v18, %v3453_v46  ;;  %v3560_v53 = vsel %vm6099_vm9, %v3458_v33, %v6416_v60 }
 0x37b   : > { %v3532_v10 = vsel %vm3425_vm7, %v3457_v1, %v3456_v15  ;;  %v3558_v11 = vsel %vm6099_vm9, %v6513_v25, %v6395_v44  ;;  %v3559_v20 = vsel %vm6099_vm9, %v6516_v51, %v6404_v22  ;;  %v3710_v24 = vsel %vm6105_vm10, %v3682_v54, %v3560_v53 }
 0x37c   : > { %v3561_v6 = vsel %vm6099_vm9, %v3532_v10, %v3345_v39  ;;  %v3627_v60 = vsel %vm3607_vm8, %v3626_v32, %v3584_v36  ;;  %v3629_v29 = vsel %vm3607_vm8, %v3628_v4, %v3585_v34  ;;  %v3747_v44 = vsel %vm6160_vm15, %v6419_v55, %v3710_v24 }
 0x37d   : > { %v4729_v12 = vpop.f32.mrb[60].mxu1  ;;  %v3681_v45 = vsel %vm3607_vm8, %v3584_v36, %v3626_v32  ;;  %v3709_v22 = vsel %vm6105_vm10, %v3627_v60, %v3559_v20  ;;  %v3711_v62 = vsel %vm6105_vm10, %v3629_v29, %v3561_v6  ;;  %v3784_v43 = vsel %vm6176_vm0, %v6422_v56, %v3747_v44 }
 0x37e   : > { %v3373_v52 = vpop.f32.mrb[61].mxu1  ;;  %v3708_v14 = vsel %vm6105_vm10, %v3681_v45, %v3558_v11  ;;  %v3746_v55 = vsel %vm6160_vm15, %v6437_v21, %v3709_v22  ;;  %v3748_v58 = vsel %vm6160_vm15, %v6425_v2, %v3711_v62  ;;  %3816 = vst [vmem:[%s6214_s28 + $0xa0] sm:$0xff] %v3784_v43  ;;  %v3463_v23 = vrot.slane %v6508_v31, 1 }
 0x37f   : > { %v4730_v48 = vpop.f32.mrb[62].mxu1  ;;  %v3745_v63 = vsel %vm6160_vm15, %v6434_v0, %v3708_v14  ;;  %v3783_v56 = vsel %vm6176_vm0, %v3623_v7, %v3746_v55  ;;  %v3785_v35 = vsel %vm6176_vm0, %v6428_v3, %v3748_v58  ;;  %v3459_v28 = vrot.slane %v3358_v19, 1 }
 0x380   : > { %v3376_v21 = vpop.f32.mrb[63].mxu1  ;;  %v3782_v2 = vsel %vm6176_vm0, %v6458_v16, %v3745_v63  ;;  %3815 = vst [vmem:[%s6214_s28 + $0x98] sm:$0xff] %v3783_v56  ;;  %3817 = vst [vmem:[%s6214_s28 + $0xa8] sm:$0xff] %v3785_v35  ;;  %v3587_v37 = vrot.slane %v6508_v31, 7  ;;  %v3361_v0 = vadd.f32 %v6081_v50, %v3360_v59  ;;  %v3630_v7 = vrot.slane %v3358_v19, 7 }
 0x381   : > { %3814 = vst [vmem:[%s6214_s28 + $0x90] sm:$0xff] %v3782_v2  ;;  %v6574_v39 = vsel %vm3425_vm7, %v3462_v42, %v3463_v23  ;;  %v6577_v3 = vsel %vm3425_vm7, %v3463_v23, %v3462_v42  ;;  %v3382_v13 = vadd.f32 %v4729_v12, %v6081_v50  ;;  %v3385_v34 = vadd.f32 %v4730_v48, %v6081_v50 }
 0x382   : > { %v3564_v16 = vsel %vm6099_vm9, %v6574_v39, %v3358_v19  ;;  %v3684_v15 = vsel %vm3607_vm8, %v3587_v37, %v3632_v41  ;;  %v3460_v4 = vrot.slane %v3361_v0, 1  ;;  %v3565_v46 = vsel %vm6099_vm9, %v6577_v3, %v3361_v0 }
 0x383   : > { %v3714_v32 = vsel %vm6105_vm10, %v3684_v15, %v3564_v16  ;;  %v3586_v59 = vrot.slane %v3361_v0, 7  ;;  %v6590_v1 = vsel %vm3607_vm8, %v3632_v41, %v3587_v37  ;;  %v3374_v44 = vadd.f32 %v6081_v50, %v3373_v52 }
 0x384   : > { %v3751_v18 = vsel %vm6160_vm15, %v3458_v33, %v3714_v32  ;;  %v6596_v36 = vsel %vm3425_vm7, %v3459_v28, %v3460_v4  ;;  %v6599_v42 = vsel %vm3425_vm7, %v3460_v4, %v3459_v28  ;;  %v3715_v19 = vsel %vm6105_vm10, %v6590_v1, %v3565_v46 }
 0x385   : > { %v3788_v41 = vsel %vm6176_vm0, %v3682_v54, %v3751_v18  ;;  %v3562_v53 = vsel %vm6099_vm9, %v6596_v36, %v6413_v57  ;;  %v3563_v33 = vsel %vm6099_vm9, %v6599_v42, %v6492_v17  ;;  %v3631_v11 = vsel %vm3607_vm8, %v3630_v7, %v3586_v59 }
 0x386   : > { %3820 = vst [vmem:[%s6214_s28 + $0xc0] sm:$0xff] %v3788_v41  ;;  %v3683_v20 = vsel %vm3607_vm8, %v3586_v59, %v3630_v7  ;;  %v3713_v24 = vsel %vm6105_vm10, %v3631_v11, %v3563_v33  ;;  %v3752_v54 = vsel %vm6160_vm15, %v3532_v10, %v3715_v19  ;;  %v3570_v57 = vsel %vm6099_vm9, %v6118_v5, %v3382_v13 }
 0x387   : > { %v3712_v17 = vsel %vm6105_vm10, %v3683_v20, %v3562_v53  ;;  %v3750_v6 = vsel %vm6160_vm15, %v6516_v51, %v3713_v24  ;;  %v3789_v12 = vsel %vm6176_vm0, %v3629_v29, %v3752_v54  ;;  %v3720_v5 = vsel %vm6105_vm10, %v6121_v27, %v3570_v57 }
 0x388   : > { %v3749_v10 = vsel %vm6160_vm15, %v6513_v25, %v3712_v17  ;;  %v3787_v22 = vsel %vm6176_vm0, %v3627_v60, %v3750_v6  ;;  %3821 = vst [vmem:[%s6214_s28 + $0xc8] sm:$0xff] %v3789_v12  ;;  %v3468_v62 = vrot.slane %v3382_v13, 1  ;;  %v3469_v29 = vrot.slane %v3385_v34, 1 }
 0x389   : > { %v3786_v51 = vsel %vm6176_vm0, %v3681_v45, %v3749_v10  ;;  %3819 = vst [vmem:[%s6214_s28 + $0xb8] sm:$0xff] %v3787_v22  ;;  %v3571_v52 = vsel %vm6099_vm9, %v6135_v61, %v3385_v34  ;;  %v3636_v25 = vrot.slane %v3382_v13, 7  ;;  %v3589_v43 = vrot.slane %v3385_v34, 7 }
 0x38a   : > { %3818 = vst [vmem:[%s6214_s28 + $0xb0] sm:$0xff] %v3786_v51  ;;  %v3721_v60 = vsel %vm6105_vm10, %v6139_v40, %v3571_v52  ;;  %v3377_v27 = vadd.f32 %v6081_v50, %v3376_v21  ;;  %v3465_v14 = vrot.slane %v3374_v44, 1  ;;  %v3634_v55 = vrot.slane %v3374_v44, 7 }
 0x38b   : > { %v3470_v45 = vsel %vm3425_vm7, %v3468_v62, %v3469_v29  ;;  %v3536_v58 = vsel %vm3425_vm7, %v3469_v29, %v3468_v62  ;;  %v3686_v48 = vsel %vm3607_vm8, %v3589_v43, %v3636_v25  ;;  %v3637_v28 = vsel %vm3607_vm8, %v3636_v25, %v3589_v43 }
 0x38c   : > { %v3568_v61 = vsel %vm6099_vm9, %v3470_v45, %v3374_v44  ;;  %v3727_v63 = vsel %vm6160_vm15, %v3470_v45, %v6125_v47  ;;  %v3466_v40 = vrot.slane %v3377_v27, 1  ;;  %v3569_v35 = vsel %vm6099_vm9, %v3536_v58, %v3377_v27 }
 0x38d   : > { %v3718_v50 = vsel %vm6105_vm10, %v3686_v48, %v3568_v61  ;;  %v3764_v56 = vsel %vm6176_vm0, %v3686_v48, %v3727_v63  ;;  %v3588_v23 = vrot.slane %v3377_v27, 7  ;;  %v3719_v4 = vsel %vm6105_vm10, %v3637_v28, %v3569_v35 }
 0x38e   : > { %v3755_v21 = vsel %vm6160_vm15, %v6574_v39, %v3718_v50  ;;  %3796 = vst [vmem:[%s6214_s28] sm:$0xff] %v3764_v56  ;;  %v3467_v2 = vsel %vm3425_vm7, %v3465_v14, %v3466_v40  ;;  %v3535_v47 = vsel %vm3425_vm7, %v3466_v40, %v3465_v14 }
 0x38f   : > { %v3792_v37 = vsel %vm6176_vm0, %v3684_v15, %v3755_v21  ;;  %v3566_v0 = vsel %vm6099_vm9, %v3467_v2, %v6496_v38  ;;  %v3567_v7 = vsel %vm6099_vm9, %v3535_v47, %v6508_v31  ;;  %v3635_v39 = vsel %vm3607_vm8, %v3634_v55, %v3588_v23 }
 0x390   : > { %3824 = vst [vmem:[%s6214_s28 + $0xe0] sm:$0xff] %v3792_v37  ;;  %v3685_v13 = vsel %vm3607_vm8, %v3588_v23, %v3634_v55  ;;  %v3717_v16 = vsel %vm6105_vm10, %v3635_v39, %v3567_v7  ;;  %v3728_v38 = vsel %vm6160_vm15, %v3536_v58, %v6129_v8  ;;  %v3756_v15 = vsel %vm6160_vm15, %v6577_v3, %v3719_v4 }
 0x391   : > { %v3716_v49 = vsel %vm6105_vm10, %v3685_v13, %v3566_v0  ;;  %v3754_v31 = vsel %vm6160_vm15, %v6599_v42, %v3717_v16  ;;  %v3757_v46 = vsel %vm6160_vm15, %v3467_v2, %v3720_v5  ;;  %v3758_v8 = vsel %vm6160_vm15, %v3535_v47, %v3721_v60 }
 0x392   : > { %v3753_v9 = vsel %vm6160_vm15, %v6596_v36, %v3716_v49  ;;  %v3765_v3 = vsel %vm6176_vm0, %v3637_v28, %v3728_v38  ;;  %v3791_v32 = vsel %vm6176_vm0, %v3631_v11, %v3754_v31  ;;  %v3793_v34 = vsel %vm6176_vm0, %v6590_v1, %v3756_v15 }
 0x393   : > { %v3790_v59 = vsel %vm6176_vm0, %v3683_v20, %v3753_v9  ;;  %v3794_v18 = vsel %vm6176_vm0, %v3685_v13, %v3757_v46  ;;  %v3795_v30 = vsel %vm6176_vm0, %v3635_v39, %v3758_v8  ;;  %3797 = vst [vmem:[%s6214_s28 + $0x8] sm:$0xff] %v3765_v3  ;;  %3823 = vst [vmem:[%s6214_s28 + $0xd8] sm:$0xff] %v3791_v32 }
 0x394   : > { %3822 = vst [vmem:[%s6214_s28 + $0xd0] sm:$0xff] %v3790_v59  ;;  %3825 = vst [vmem:[%s6214_s28 + $0xe8] sm:$0xff] %v3793_v34 }
 0x395   : > { %3826 = vst [vmem:[%s6214_s28 + $0xf0] sm:$0xff] %v3794_v18  ;;  %3827 = vst [vmem:[%s6214_s28 + $0xf8] sm:$0xff] %v3795_v30 }
 0x396   : > { %5172 = shalt.err (!%p5169_p1)
}
 0x397   : > { %s5173_s24 = scalar_lea.hbm %s6706_s11, 4096  ;;  %s5177_s16 = scalar_lea.hbm %s6781_s5, 8192 }
 0x398   : > { %p5174_p13 = scmp.ne.s32.totalorder %s6706_s11, %s5173_s24  ;;  %p5178_p4 = scmp.lt.u32.totalorder %s6706_s11, %s6781_s5 }
 0x399   : > { %p5179_p5 = scmp.lt.u32.totalorder %s5177_s16, %s5173_s24  ;;  %p5181_p11 = scmp.lt.u32.totalorder %s5173_s24, %s6706_s11 }
 0x39a   : > { %p5175_p6 = pnand %p5174_p13, %p6803_p0 }
 0x39b   : > { %p5180_p8 = por %p5179_p5, %p5178_p4 }
 0x39c   : > { %p5176_p10 = pneg %p5175_p6 }
 0x39d   : > { %p5182_p2 = por %p5181_p11, %p5180_p8 }
 0x39f   : > { %p5183_p3 = pnand %p5182_p2, %p5176_p10 }
 0x3a1   : > { %5186 = shalt.err (!%p5183_p3)
}
 0x3a2   : > { %s5238_s12 = smov 128   ;;  %s5239_s22 = smov 8  }
 0x3a3   : > { %4997 = dma.vmem_to_hbm [thread:$0]  (%p6803_p0), %s6708_s13, 4096, %s6706_s11, %s3829_s17, %s5238_s12, %s5238_s12, %s5239_s22  }
 0x3a4 PF: > { %s3857_s30 = sand.u32 1, %s5217_s18   ;;  %p6804_p7 = scmp.ne.s32.totalorder %s6786_s25, 0 }
 0x3a5   : > { %p6805_p9 = scmp.ge.s32.totalorder %s5229_s21, 2  ;;  %s3858_s7 = scalar_lea.sflag [#allocation5], %s3857_s30 }
 0x3a7   : > { %p5011_p12 = pnand %p6805_p9, %p6804_p7 }
 0x3a9   : > { %5212 = dma.done.wait (!%p5011_p12), %s3858_s7, 4096  }
 0x3aa   : > { %5214 = vsyncadd (!%p5011_p12), %s3858_s7, 4294963200  ;;  %p19_p1 = scmp.ge.s32.totalorder %s5386_s29, 4   ;;  %s6806_s18 = smov %s5221_s19 }
 0x3ab   : > { %s6807_s19 = smov %s5225_s20  ;;  %s6808_s20 = smov %s5402_s27 }
 0x3ac   : > { %s6809_s21 = smov %s5386_s29  ;;  %21 = sbr.rel (!%p19_p1) target bundleno = 6 (0x6), region = 103 }
 0x3b3   :  { %3863 = vsyncpa [#allocation4], 1 }
 0x3b4   :  { %3865 = vsyncpa [#allocation4 + $0x1], 1 }
 0x3b5   :  { %3866 = vsyncpa [#allocation7], 1 }
 0x3b6   :  { %3867 = vsyncpa [#allocation5], 1 }
 0x3b7   :  { %3869 = vsyncpa [#allocation5 + $0x1], 1 }

</bundles_post_ra>
